<compile_context>
chip_gen: v6e
topology: v6e:2x2x1
jax: 0.10.0
libtpu: 0.0.40
codegen_flags: <defaults>
</compile_context>

<pallas_src>
import math
from functools import partial

import jax
import jax.numpy as jnp
from jax import lax
from jax.experimental import pallas as pl
from jax.experimental.pallas import tpu as pltpu

LANE = 128


def _default_exp_dtype():
    """bf16 exp on v6e/v7x (EUP supports bf16), f32 on v5e and anything unknown."""
    try:
        kind = jax.devices()[0].device_kind.lower()
    except Exception:  # pragma: no cover - no device available
        return jnp.float32
    if "v6" in kind or "v7" in kind or "7x" in kind:
        return jnp.bfloat16
    return jnp.float32


def _make_kernel(num_heads, e_q, e_kv, d_att, n, cps, use_mask, exp_dtype):
    """Build the MHA kernel for static (num_heads, embed dims, d_attention, n_words,
    chunks-per-grid-step, mask usage, exp dtype)."""
    off_wq = 0
    off_wk = off_wq + num_heads * e_q * d_att
    off_wvo = off_wk + num_heads * e_kv * d_att
    scaling = float(1.0 / math.sqrt(d_att))
    neg = float(-jnp.finfo(jnp.float32).max)
    f32_exp = jnp.dtype(exp_dtype) == jnp.dtype(jnp.float32)

    def kernel(w_ref, xq_ref, xk_ref, xv_ref, mask_ref, out_ref):
        # w_ref   : (n_weights,) f32 in SMEM (packed W_Q | W_K | W_V@W_O)
        # xq_ref  : (e_q,  cps, n, 128)  VMEM   (batch-on-lanes planes)
        # xk_ref  : (e_kv, cps, n, 128)  VMEM
        # xv_ref  : (e_kv, cps, n, 128)  VMEM
        # mask_ref: (cps, n, 128) f32 {0,1}
        # out_ref : (e_q,  cps, n, 128)

        # ---- hoisted out of the chunk loop: scalar weight reads (once/grid step) ----
        wq = [[[w_ref[off_wq + (h * e_q + d) * d_att + a] for a in range(d_att)]
               for d in range(e_q)] for h in range(num_heads)]
        wk = [[[w_ref[off_wk + (h * e_kv + d) * d_att + a] for a in range(d_att)]
               for d in range(e_kv)] for h in range(num_heads)]
        wvo = [[[w_ref[off_wvo + (h * e_kv + d) * e_q + e] for e in range(e_q)]
                for d in range(e_kv)] for h in range(num_heads)]

        if use_mask:
            row = lax.broadcasted_iota(jnp.int32, (n, LANE), 0)
            neq = [row != j for j in range(n)]          # chunk- & head-invariant

        def chunk_body(c, carry):
            # Feature planes for this 128-sample chunk, each (n, 128).
            xq = [xq_ref[d, c] for d in range(e_q)]
            xk = [xk_ref[d, c] for d in range(e_kv)]
            xv = [xv_ref[d, c] for d in range(e_kv)]

            if use_mask:
                maskf = mask_ref[c]                      # (n, 128)
                # Head-invariant pair masks, computed once per chunk.
                pair = [(maskf * maskf[j:j + 1, :] > 0.5) & neq[j] for j in range(n)]

            out_planes = [None] * e_q

            for h in range(num_heads):
                # Projections: scalar-broadcast FMAs on the VPU (no MXU for 3-wide dims).
                q, k = [], []
                for a in range(d_att):
                    acc_q = wq[h][0][a] * xq[0]
                    for d in range(1, e_q):
                        acc_q = acc_q + wq[h][d][a] * xq[d]
                    acc_k = wk[h][0][a] * xk[0]
                    for d in range(1, e_kv):
                        acc_k = acc_k + wk[h][d][a] * xk[d]
                    q.append(acc_q * scaling)            # fold 1/sqrt(d_att) into q
                    k.append(acc_k)
                vo = []                                  # V pre-fused with W_O slice
                for e in range(e_q):
                    acc = wvo[h][0][e] * xv[0]
                    for d in range(1, e_kv):
                        acc = acc + wvo[h][d][e] * xv[d]
                    vo.append(acc)

                # dots as per-j planes (query index i on sublanes, batch on lanes);
                # softmax over j becomes pure element-wise VPU work across planes.
                dots = []
                for j in range(n):
                    d_j = q[0] * k[0][j:j + 1, :]
                    for a in range(1, d_att):
                        d_j = d_j + q[a] * k[a][j:j + 1, :]
                    if use_mask:
                        d_j = jnp.where(pair[j], d_j, neg)
                    dots.append(d_j)

                m = dots[0]
                for j in range(1, n):
                    m = jnp.maximum(m, dots[j])
                if f32_exp:
                    exps = [jnp.exp(d_j - m) for d_j in dots]
                else:
                    exps = [jnp.exp((d_j - m).astype(exp_dtype)).astype(jnp.float32)
                            for d_j in dots]
                ssum = exps[0]
                for j in range(1, n):
                    ssum = ssum + exps[j]
                inv = pl.reciprocal(ssum, approx=True)   # EUP slot (VALU stays free)
                inv = inv * (2.0 - ssum * inv)           # one Newton step -> f32 accuracy

                # attn @ V (fused with output linear), softmax normalization deferred:
                # accumulate unnormalized, scale once per output feature.
                u = [None] * e_q
                for j in range(n):
                    for e in range(e_q):
                        contrib = exps[j] * vo[e][j:j + 1, :]
                        u[e] = contrib if u[e] is None else u[e] + contrib
                for e in range(e_q):
                    scaled = u[e] * inv
                    out_planes[e] = scaled if out_planes[e] is None \
                        else out_planes[e] + scaled

            for e in range(e_q):
                out_ref[e, c] = out_planes[e]
            return carry

        lax.fori_loop(0, cps, chunk_body, 0)

    return kernel


def _pack_weights(params):
    """Flatten W_Q, W_K and the fused W_V @ W_O into one f32 array for SMEM."""
    wq, wk, wv, wo = params
    num_heads, e_q, d_att = wq.shape
    wo_r = wo.reshape(num_heads, d_att, e_q)
    wvo = jnp.einsum('hda,hae->hde', wv, wo_r)           # (H, e_kv, e_q)
    return jnp.concatenate(
        [wq.reshape(-1), wk.reshape(-1), wvo.reshape(-1)]).astype(jnp.float32)


def _choose_tiling(b, tb_cap):
    """chunks-per-grid-step and grid length; keep grid >= 2 when possible (v7x 2 TCs)."""
    chunks_total = max(1, -(-b // LANE))
    max_cps = max(1, tb_cap // LANE)
    if chunks_total >= 2:
        cps = min(max_cps, -(-chunks_total // 2))
    else:
        cps = 1
    grid = -(-chunks_total // cps)
    return cps, grid


@partial(jax.jit, static_argnames=("tb_cap", "exp_dtype"))
def _forward_impl(q_vec, k_vec, v_vec, mask, params, *, tb_cap, exp_dtype):
    wq, wk, wv, wo = params
    num_heads, e_q, d_att = wq.shape
    e_kv = wk.shape[1]
    b, n, _ = q_vec.shape

    w_flat = _pack_weights(params)

    use_mask = mask is not None
    if mask is None:
        mask = jnp.ones((b, n), jnp.float32)

    cps, grid = _choose_tiling(b, tb_cap)
    bp = grid * cps * LANE

    def pad_b(x):
        if bp == b:
            return x
        return jnp.pad(x, ((0, bp - b),) + ((0, 0),) * (x.ndim - 1))

    xq = pad_b(q_vec.astype(jnp.float32))
    xk = pad_b(k_vec.astype(jnp.float32))
    xv = pad_b(v_vec.astype(jnp.float32))
    mk = pad_b(mask.astype(jnp.float32))

    # (bp, n, f) -> (f, C, n, 128): chunk index leading, batch-within-chunk on lanes.
    def to_planes(x):
        f = x.shape[-1]
        return jnp.transpose(x.reshape(grid * cps, LANE, n, f), (3, 0, 2, 1))

    xq, xk, xv = to_planes(xq), to_planes(xk), to_planes(xv)
    mk = jnp.transpose(mk.reshape(grid * cps, LANE, n), (0, 2, 1))

    kernel = _make_kernel(num_heads, e_q, e_kv, d_att, n, cps, use_mask, exp_dtype)

    grid_spec = pltpu.PrefetchScalarGridSpec(
        num_scalar_prefetch=0,
        grid=(grid,),
        in_specs=[
            pl.BlockSpec(memory_space=pltpu.MemorySpace.SMEM),       # packed weights
            pl.BlockSpec((e_q, cps, n, LANE), lambda i: (0, i, 0, 0)),
            pl.BlockSpec((e_kv, cps, n, LANE), lambda i: (0, i, 0, 0)),
            pl.BlockSpec((e_kv, cps, n, LANE), lambda i: (0, i, 0, 0)),
            pl.BlockSpec((cps, n, LANE), lambda i: (i, 0, 0)),
        ],
        out_specs=pl.BlockSpec((e_q, cps, n, LANE), lambda i: (0, i, 0, 0)),
    )

    out = pl.pallas_call(
        kernel,
        out_shape=jax.ShapeDtypeStruct((e_q, grid * cps, n, LANE), jnp.float32),
        grid_spec=grid_spec,
        compiler_params=pltpu.CompilerParams(
            dimension_semantics=("parallel",)),
    )(w_flat, xq, xk, xv, mk)

    # (e, C, n, 128) -> (B, n, e).  Kept under the same jit so XLA can fuse the
    # layout ops; ideally the caller would consume the plane layout directly.
    return jnp.transpose(out, (1, 3, 2, 0)).reshape(bp, n, e_q)[:b]


def multi_head_attention_forward(q_vec, k_vec, v_vec, mask, params, *,
                                 tb_cap=2048, exp_dtype=None):
    """params = (wq (H,E,Da), wk (H,E2,Da), wv (H,E2,Da), wo (H*Da,E)), stored as
    (in_features, out_features) so `x @ W` matches nn.Linear(bias=False)."""
    if exp_dtype is None:
        exp_dtype = _default_exp_dtype()
    return _forward_impl(q_vec, k_vec, v_vec, mask, params,
                         tb_cap=int(tb_cap), exp_dtype=exp_dtype)


def init_params(key, e_q=3, e_kv=3, d_att=3, num_heads=2):
    ks = jax.random.split(key, 4)
    s = 0.4
    wq = s * jax.random.normal(ks[0], (num_heads, e_q, d_att), jnp.float32)
    wk = s * jax.random.normal(ks[1], (num_heads, e_kv, d_att), jnp.float32)
    wv = s * jax.random.normal(ks[2], (num_heads, e_kv, d_att), jnp.float32)
    wo = s * jax.random.normal(ks[3], (num_heads * d_att, e_q), jnp.float32)
    return wq, wk, wv, wo


def multi_head_attention_reference(q_vec, k_vec, v_vec, mask, params):
    """Pure-JAX mirror of the PyTorch MultiHeadAttention.forward (sanity check)."""
    wq, wk, wv, wo = params
    num_heads, _, d_att = wq.shape
    n = q_vec.shape[1]
    neg = -jnp.finfo(jnp.float32).max
    scaling = 1.0 / math.sqrt(d_att)
    if mask is not None:
        eye = jnp.eye(n, dtype=bool)
        pair = mask[:, None, :] & mask[:, :, None] & (~eye)[None]
    heads = []
    for h in range(num_heads):
        q = q_vec @ wq[h]
        k = k_vec @ wk[h]
        v = v_vec @ wv[h]
        dots = jnp.einsum('bid,bjd->bij', q, k) * scaling
        if mask is not None:
            dots = jnp.where(pair, dots, neg)
        attn = jax.nn.softmax(dots, axis=-1)
        heads.append(jnp.einsum('bij,bjd->bid', attn, v))
    return jnp.concatenate(heads, axis=-1) @ wo


if __name__ == "__main__":
    key = jax.random.PRNGKey(0)
    kq, kk, kv, km, kp = jax.random.split(key, 5)

    # Small shapes consistent with the monstereo MultiHeadAttention usage:
    # n_words=8 tokens of embed_dim=3, d_attention=3, 2 heads; B=512 gives
    # a grid of 2 parallel steps x 2 in-kernel 128-lane chunks each.
    B, N_WORDS = 512, 8
    EMBED_DIM, EMBED_DIM2, D_ATT, NUM_HEADS = 3, 3, 3, 2

    q_vec = jax.random.normal(kq, (B, N_WORDS, EMBED_DIM), jnp.float32)
    k_vec = jax.random.normal(kk, (B, N_WORDS, EMBED_DIM2), jnp.float32)
    v_vec = jax.random.normal(kv, (B, N_WORDS, EMBED_DIM2), jnp.float32)
    mask = jax.random.uniform(km, (B, N_WORDS)) > 0.3   # some occluded/padded tokens

    params = init_params(kp, EMBED_DIM, EMBED_DIM2, D_ATT, NUM_HEADS)

    ref = multi_head_attention_reference(q_vec, k_vec, v_vec, mask, params)

    # 1) Exact-math path (f32 exp everywhere): tight tolerance.
    out_f32 = jax.block_until_ready(
        multi_head_attention_forward(q_vec, k_vec, v_vec, mask, params,
                                     exp_dtype=jnp.float32))
    assert out_f32.shape == (B, N_WORDS, EMBED_DIM)
    assert jnp.allclose(out_f32, ref, atol=1e-3, rtol=1e-3), "f32 path mismatch"

    # 2) Auto path (bf16 exp on v6e/v7x, f32 elsewhere): looser tolerance for bf16.
    auto_dtype = _default_exp_dtype()
    out_auto = jax.block_until_ready(
        multi_head_attention_forward(q_vec, k_vec, v_vec, mask, params))
    tol = 1e-3 if jnp.dtype(auto_dtype) == jnp.dtype(jnp.float32) else 3e-2
    assert jnp.allclose(out_auto, ref, atol=tol, rtol=tol), "auto-exp path mismatch"

    # 3) mask=None path: the original module applies NO masking in that case.
    ref_nm = multi_head_attention_reference(q_vec, k_vec, v_vec, None, params)
    out_nm = jax.block_until_ready(
        multi_head_attention_forward(q_vec, k_vec, v_vec, None, params,
                                     exp_dtype=jnp.float32))
    assert jnp.allclose(out_nm, ref_nm, atol=1e-3, rtol=1e-3), "mask=None path mismatch"

    print("KERNEL_OK")
</pallas_src>

<mosaic_0001>
module attributes {stable_mosaic.version = 11 : i64} {
  func.func @kernel(%arg0: i32, %arg1: memref<54xf32, #tpu.memory_space<smem>>, %arg2: memref<3x2x8x128xf32, #tpu.memory_space<vmem>>, %arg3: memref<3x2x8x128xf32, #tpu.memory_space<vmem>>, %arg4: memref<3x2x8x128xf32, #tpu.memory_space<vmem>>, %arg5: memref<2x8x128xf32, #tpu.memory_space<vmem>>, %arg6: memref<3x2x8x128xf32, #tpu.memory_space<vmem>>) attributes {dimension_semantics = [#tpu.dimension_semantics<parallel>], iteration_bounds = array<i64: 2>, scalar_prefetch = 0 : i64, scratch_operands = 0 : i64, tpu.core_type = #tpu.core_type<tc>, window_params = [{transform_indices = @transform_0, window_bounds = array<i64: 54>}, {transform_indices = @transform_1, window_bounds = array<i64: 3, 2, 8, 128>}, {transform_indices = @transform_2, window_bounds = array<i64: 3, 2, 8, 128>}, {transform_indices = @transform_3, window_bounds = array<i64: 3, 2, 8, 128>}, {transform_indices = @transform_4, window_bounds = array<i64: 2, 8, 128>}, {transform_indices = @transform_5, window_bounds = array<i64: 3, 2, 8, 128>}]} {
    %c0 = arith.constant 0 : index
    %0 = memref.load %arg1[%c0] : memref<54xf32, #tpu.memory_space<smem>>
    %c1 = arith.constant 1 : index
    %1 = memref.load %arg1[%c1] : memref<54xf32, #tpu.memory_space<smem>>
    %c2 = arith.constant 2 : index
    %2 = memref.load %arg1[%c2] : memref<54xf32, #tpu.memory_space<smem>>
    %c3 = arith.constant 3 : index
    %3 = memref.load %arg1[%c3] : memref<54xf32, #tpu.memory_space<smem>>
    %c4 = arith.constant 4 : index
    %4 = memref.load %arg1[%c4] : memref<54xf32, #tpu.memory_space<smem>>
    %c5 = arith.constant 5 : index
    %5 = memref.load %arg1[%c5] : memref<54xf32, #tpu.memory_space<smem>>
    %c6 = arith.constant 6 : index
    %6 = memref.load %arg1[%c6] : memref<54xf32, #tpu.memory_space<smem>>
    %c7 = arith.constant 7 : index
    %7 = memref.load %arg1[%c7] : memref<54xf32, #tpu.memory_space<smem>>
    %c8 = arith.constant 8 : index
    %8 = memref.load %arg1[%c8] : memref<54xf32, #tpu.memory_space<smem>>
    %c9 = arith.constant 9 : index
    %9 = memref.load %arg1[%c9] : memref<54xf32, #tpu.memory_space<smem>>
    %c10 = arith.constant 10 : index
    %10 = memref.load %arg1[%c10] : memref<54xf32, #tpu.memory_space<smem>>
    %c11 = arith.constant 11 : index
    %11 = memref.load %arg1[%c11] : memref<54xf32, #tpu.memory_space<smem>>
    %c12 = arith.constant 12 : index
    %12 = memref.load %arg1[%c12] : memref<54xf32, #tpu.memory_space<smem>>
    %c13 = arith.constant 13 : index
    %13 = memref.load %arg1[%c13] : memref<54xf32, #tpu.memory_space<smem>>
    %c14 = arith.constant 14 : index
    %14 = memref.load %arg1[%c14] : memref<54xf32, #tpu.memory_space<smem>>
    %c15 = arith.constant 15 : index
    %15 = memref.load %arg1[%c15] : memref<54xf32, #tpu.memory_space<smem>>
    %c16 = arith.constant 16 : index
    %16 = memref.load %arg1[%c16] : memref<54xf32, #tpu.memory_space<smem>>
    %c17 = arith.constant 17 : index
    %17 = memref.load %arg1[%c17] : memref<54xf32, #tpu.memory_space<smem>>
    %c18 = arith.constant 18 : index
    %18 = memref.load %arg1[%c18] : memref<54xf32, #tpu.memory_space<smem>>
    %c19 = arith.constant 19 : index
    %19 = memref.load %arg1[%c19] : memref<54xf32, #tpu.memory_space<smem>>
    %c20 = arith.constant 20 : index
    %20 = memref.load %arg1[%c20] : memref<54xf32, #tpu.memory_space<smem>>
    %c21 = arith.constant 21 : index
    %21 = memref.load %arg1[%c21] : memref<54xf32, #tpu.memory_space<smem>>
    %c22 = arith.constant 22 : index
    %22 = memref.load %arg1[%c22] : memref<54xf32, #tpu.memory_space<smem>>
    %c23 = arith.constant 23 : index
    %23 = memref.load %arg1[%c23] : memref<54xf32, #tpu.memory_space<smem>>
    %c24 = arith.constant 24 : index
    %24 = memref.load %arg1[%c24] : memref<54xf32, #tpu.memory_space<smem>>
    %c25 = arith.constant 25 : index
    %25 = memref.load %arg1[%c25] : memref<54xf32, #tpu.memory_space<smem>>
    %c26 = arith.constant 26 : index
    %26 = memref.load %arg1[%c26] : memref<54xf32, #tpu.memory_space<smem>>
    %c27 = arith.constant 27 : index
    %27 = memref.load %arg1[%c27] : memref<54xf32, #tpu.memory_space<smem>>
    %c28 = arith.constant 28 : index
    %28 = memref.load %arg1[%c28] : memref<54xf32, #tpu.memory_space<smem>>
    %c29 = arith.constant 29 : index
    %29 = memref.load %arg1[%c29] : memref<54xf32, #tpu.memory_space<smem>>
    %c30 = arith.constant 30 : index
    %30 = memref.load %arg1[%c30] : memref<54xf32, #tpu.memory_space<smem>>
    %c31 = arith.constant 31 : index
    %31 = memref.load %arg1[%c31] : memref<54xf32, #tpu.memory_space<smem>>
    %c32 = arith.constant 32 : index
    %32 = memref.load %arg1[%c32] : memref<54xf32, #tpu.memory_space<smem>>
    %c33 = arith.constant 33 : index
    %33 = memref.load %arg1[%c33] : memref<54xf32, #tpu.memory_space<smem>>
    %c34 = arith.constant 34 : index
    %34 = memref.load %arg1[%c34] : memref<54xf32, #tpu.memory_space<smem>>
    %c35 = arith.constant 35 : index
    %35 = memref.load %arg1[%c35] : memref<54xf32, #tpu.memory_space<smem>>
    %c36 = arith.constant 36 : index
    %36 = memref.load %arg1[%c36] : memref<54xf32, #tpu.memory_space<smem>>
    %c37 = arith.constant 37 : index
    %37 = memref.load %arg1[%c37] : memref<54xf32, #tpu.memory_space<smem>>
    %c38 = arith.constant 38 : index
    %38 = memref.load %arg1[%c38] : memref<54xf32, #tpu.memory_space<smem>>
    %c39 = arith.constant 39 : index
    %39 = memref.load %arg1[%c39] : memref<54xf32, #tpu.memory_space<smem>>
    %c40 = arith.constant 40 : index
    %40 = memref.load %arg1[%c40] : memref<54xf32, #tpu.memory_space<smem>>
    %c41 = arith.constant 41 : index
    %41 = memref.load %arg1[%c41] : memref<54xf32, #tpu.memory_space<smem>>
    %c42 = arith.constant 42 : index
    %42 = memref.load %arg1[%c42] : memref<54xf32, #tpu.memory_space<smem>>
    %c43 = arith.constant 43 : index
    %43 = memref.load %arg1[%c43] : memref<54xf32, #tpu.memory_space<smem>>
    %c44 = arith.constant 44 : index
    %44 = memref.load %arg1[%c44] : memref<54xf32, #tpu.memory_space<smem>>
    %c45 = arith.constant 45 : index
    %45 = memref.load %arg1[%c45] : memref<54xf32, #tpu.memory_space<smem>>
    %c46 = arith.constant 46 : index
    %46 = memref.load %arg1[%c46] : memref<54xf32, #tpu.memory_space<smem>>
    %c47 = arith.constant 47 : index
    %47 = memref.load %arg1[%c47] : memref<54xf32, #tpu.memory_space<smem>>
    %c48 = arith.constant 48 : index
    %48 = memref.load %arg1[%c48] : memref<54xf32, #tpu.memory_space<smem>>
    %c49 = arith.constant 49 : index
    %49 = memref.load %arg1[%c49] : memref<54xf32, #tpu.memory_space<smem>>
    %c50 = arith.constant 50 : index
    %50 = memref.load %arg1[%c50] : memref<54xf32, #tpu.memory_space<smem>>
    %c51 = arith.constant 51 : index
    %51 = memref.load %arg1[%c51] : memref<54xf32, #tpu.memory_space<smem>>
    %c52 = arith.constant 52 : index
    %52 = memref.load %arg1[%c52] : memref<54xf32, #tpu.memory_space<smem>>
    %c53 = arith.constant 53 : index
    %53 = memref.load %arg1[%c53] : memref<54xf32, #tpu.memory_space<smem>>
    %54 = tpu.iota {dimensions = array<i32: 0>} : vector<8x128xi32>
    %c0_i32 = arith.constant 0 : i32
    %55 = vector.broadcast %c0_i32 : i32 to vector<8x128xi32>
    %56 = arith.cmpi ne, %54, %55 : vector<8x128xi32>
    %c1_i32 = arith.constant 1 : i32
    %57 = vector.broadcast %c1_i32 : i32 to vector<8x128xi32>
    %58 = arith.cmpi ne, %54, %57 : vector<8x128xi32>
    %c2_i32 = arith.constant 2 : i32
    %59 = vector.broadcast %c2_i32 : i32 to vector<8x128xi32>
    %60 = arith.cmpi ne, %54, %59 : vector<8x128xi32>
    %c3_i32 = arith.constant 3 : i32
    %61 = vector.broadcast %c3_i32 : i32 to vector<8x128xi32>
    %62 = arith.cmpi ne, %54, %61 : vector<8x128xi32>
    %c4_i32 = arith.constant 4 : i32
    %63 = vector.broadcast %c4_i32 : i32 to vector<8x128xi32>
    %64 = arith.cmpi ne, %54, %63 : vector<8x128xi32>
    %c5_i32 = arith.constant 5 : i32
    %65 = vector.broadcast %c5_i32 : i32 to vector<8x128xi32>
    %66 = arith.cmpi ne, %54, %65 : vector<8x128xi32>
    %c6_i32 = arith.constant 6 : i32
    %67 = vector.broadcast %c6_i32 : i32 to vector<8x128xi32>
    %68 = arith.cmpi ne, %54, %67 : vector<8x128xi32>
    %c7_i32 = arith.constant 7 : i32
    %69 = vector.broadcast %c7_i32 : i32 to vector<8x128xi32>
    %70 = arith.cmpi ne, %54, %69 : vector<8x128xi32>
    %c0_i32_0 = arith.constant 0 : i32
    %c2_i32_1 = arith.constant 2 : i32
    %71 = arith.addi %c0_i32_0, %c2_i32_1 : i32
    %c1_i32_2 = arith.constant 1 : i32
    scf.for %arg7 = %c0_i32_0 to %71 step %c1_i32_2  : i32 {
      %c0_4 = arith.constant 0 : index
      %72 = arith.index_cast %arg7 : i32 to index
      %c0_5 = arith.constant 0 : index
      %c0_6 = arith.constant 0 : index
      %73 = vector.load %arg2[%c0_4, %72, %c0_5, %c0_6] : memref<3x2x8x128xf32, #tpu.memory_space<vmem>>, vector<1x1x8x128xf32>
      %74 = vector.shape_cast %73 : vector<1x1x8x128xf32> to vector<8x128xf32>
      %c1_7 = arith.constant 1 : index
      %75 = arith.index_cast %arg7 : i32 to index
      %c0_8 = arith.constant 0 : index
      %c0_9 = arith.constant 0 : index
      %76 = vector.load %arg2[%c1_7, %75, %c0_8, %c0_9] : memref<3x2x8x128xf32, #tpu.memory_space<vmem>>, vector<1x1x8x128xf32>
      %77 = vector.shape_cast %76 : vector<1x1x8x128xf32> to vector<8x128xf32>
      %c2_10 = arith.constant 2 : index
      %78 = arith.index_cast %arg7 : i32 to index
      %c0_11 = arith.constant 0 : index
      %c0_12 = arith.constant 0 : index
      %79 = vector.load %arg2[%c2_10, %78, %c0_11, %c0_12] : memref<3x2x8x128xf32, #tpu.memory_space<vmem>>, vector<1x1x8x128xf32>
      %80 = vector.shape_cast %79 : vector<1x1x8x128xf32> to vector<8x128xf32>
      %c0_13 = arith.constant 0 : index
      %81 = arith.index_cast %arg7 : i32 to index
      %c0_14 = arith.constant 0 : index
      %c0_15 = arith.constant 0 : index
      %82 = vector.load %arg3[%c0_13, %81, %c0_14, %c0_15] : memref<3x2x8x128xf32, #tpu.memory_space<vmem>>, vector<1x1x8x128xf32>
      %83 = vector.shape_cast %82 : vector<1x1x8x128xf32> to vector<8x128xf32>
      %c1_16 = arith.constant 1 : index
      %84 = arith.index_cast %arg7 : i32 to index
      %c0_17 = arith.constant 0 : index
      %c0_18 = arith.constant 0 : index
      %85 = vector.load %arg3[%c1_16, %84, %c0_17, %c0_18] : memref<3x2x8x128xf32, #tpu.memory_space<vmem>>, vector<1x1x8x128xf32>
      %86 = vector.shape_cast %85 : vector<1x1x8x128xf32> to vector<8x128xf32>
      %c2_19 = arith.constant 2 : index
      %87 = arith.index_cast %arg7 : i32 to index
      %c0_20 = arith.constant 0 : index
      %c0_21 = arith.constant 0 : index
      %88 = vector.load %arg3[%c2_19, %87, %c0_20, %c0_21] : memref<3x2x8x128xf32, #tpu.memory_space<vmem>>, vector<1x1x8x128xf32>
      %89 = vector.shape_cast %88 : vector<1x1x8x128xf32> to vector<8x128xf32>
      %c0_22 = arith.constant 0 : index
      %90 = arith.index_cast %arg7 : i32 to index
      %c0_23 = arith.constant 0 : index
      %c0_24 = arith.constant 0 : index
      %91 = vector.load %arg4[%c0_22, %90, %c0_23, %c0_24] : memref<3x2x8x128xf32, #tpu.memory_space<vmem>>, vector<1x1x8x128xf32>
      %92 = vector.shape_cast %91 : vector<1x1x8x128xf32> to vector<8x128xf32>
      %c1_25 = arith.constant 1 : index
      %93 = arith.index_cast %arg7 : i32 to index
      %c0_26 = arith.constant 0 : index
      %c0_27 = arith.constant 0 : index
      %94 = vector.load %arg4[%c1_25, %93, %c0_26, %c0_27] : memref<3x2x8x128xf32, #tpu.memory_space<vmem>>, vector<1x1x8x128xf32>
      %95 = vector.shape_cast %94 : vector<1x1x8x128xf32> to vector<8x128xf32>
      %c2_28 = arith.constant 2 : index
      %96 = arith.index_cast %arg7 : i32 to index
      %c0_29 = arith.constant 0 : index
      %c0_30 = arith.constant 0 : index
      %97 = vector.load %arg4[%c2_28, %96, %c0_29, %c0_30] : memref<3x2x8x128xf32, #tpu.memory_space<vmem>>, vector<1x1x8x128xf32>
      %98 = vector.shape_cast %97 : vector<1x1x8x128xf32> to vector<8x128xf32>
      %99 = arith.index_cast %arg7 : i32 to index
      %c0_31 = arith.constant 0 : index
      %c0_32 = arith.constant 0 : index
      %100 = vector.load %arg5[%99, %c0_31, %c0_32] : memref<2x8x128xf32, #tpu.memory_space<vmem>>, vector<1x8x128xf32>
      %101 = vector.shape_cast %100 : vector<1x8x128xf32> to vector<8x128xf32>
      %102 = vector.extract_strided_slice %101 {offsets = [0, 0], sizes = [1, 128], strides = [1, 1]} : vector<8x128xf32> to vector<1x128xf32>
      %103 = vector.broadcast %102 : vector<1x128xf32> to vector<8x128xf32>
      %104 = arith.mulf %101, %103 : vector<8x128xf32>
      %cst = arith.constant 5.000000e-01 : f32
      %105 = vector.broadcast %cst : f32 to vector<8x128xf32>
      %106 = arith.cmpf ogt, %104, %105 : vector<8x128xf32>
      %107 = arith.andi %106, %56 : vector<8x128xi1>
      %108 = vector.extract_strided_slice %101 {offsets = [1, 0], sizes = [1, 128], strides = [1, 1]} : vector<8x128xf32> to vector<1x128xf32>
      %109 = vector.broadcast %108 : vector<1x128xf32> to vector<8x128xf32>
      %110 = arith.mulf %101, %109 : vector<8x128xf32>
      %cst_33 = arith.constant 5.000000e-01 : f32
      %111 = vector.broadcast %cst_33 : f32 to vector<8x128xf32>
      %112 = arith.cmpf ogt, %110, %111 : vector<8x128xf32>
      %113 = arith.andi %112, %58 : vector<8x128xi1>
      %114 = vector.extract_strided_slice %101 {offsets = [2, 0], sizes = [1, 128], strides = [1, 1]} : vector<8x128xf32> to vector<1x128xf32>
      %115 = vector.broadcast %114 : vector<1x128xf32> to vector<8x128xf32>
      %116 = arith.mulf %101, %115 : vector<8x128xf32>
      %cst_34 = arith.constant 5.000000e-01 : f32
      %117 = vector.broadcast %cst_34 : f32 to vector<8x128xf32>
      %118 = arith.cmpf ogt, %116, %117 : vector<8x128xf32>
      %119 = arith.andi %118, %60 : vector<8x128xi1>
      %120 = vector.extract_strided_slice %101 {offsets = [3, 0], sizes = [1, 128], strides = [1, 1]} : vector<8x128xf32> to vector<1x128xf32>
      %121 = vector.broadcast %120 : vector<1x128xf32> to vector<8x128xf32>
      %122 = arith.mulf %101, %121 : vector<8x128xf32>
      %cst_35 = arith.constant 5.000000e-01 : f32
      %123 = vector.broadcast %cst_35 : f32 to vector<8x128xf32>
      %124 = arith.cmpf ogt, %122, %123 : vector<8x128xf32>
      %125 = arith.andi %124, %62 : vector<8x128xi1>
      %126 = vector.extract_strided_slice %101 {offsets = [4, 0], sizes = [1, 128], strides = [1, 1]} : vector<8x128xf32> to vector<1x128xf32>
      %127 = vector.broadcast %126 : vector<1x128xf32> to vector<8x128xf32>
      %128 = arith.mulf %101, %127 : vector<8x128xf32>
      %cst_36 = arith.constant 5.000000e-01 : f32
      %129 = vector.broadcast %cst_36 : f32 to vector<8x128xf32>
      %130 = arith.cmpf ogt, %128, %129 : vector<8x128xf32>
      %131 = arith.andi %130, %64 : vector<8x128xi1>
      %132 = vector.extract_strided_slice %101 {offsets = [5, 0], sizes = [1, 128], strides = [1, 1]} : vector<8x128xf32> to vector<1x128xf32>
      %133 = vector.broadcast %132 : vector<1x128xf32> to vector<8x128xf32>
      %134 = arith.mulf %101, %133 : vector<8x128xf32>
      %cst_37 = arith.constant 5.000000e-01 : f32
      %135 = vector.broadcast %cst_37 : f32 to vector<8x128xf32>
      %136 = arith.cmpf ogt, %134, %135 : vector<8x128xf32>
      %137 = arith.andi %136, %66 : vector<8x128xi1>
      %138 = vector.extract_strided_slice %101 {offsets = [6, 0], sizes = [1, 128], strides = [1, 1]} : vector<8x128xf32> to vector<1x128xf32>
      %139 = vector.broadcast %138 : vector<1x128xf32> to vector<8x128xf32>
      %140 = arith.mulf %101, %139 : vector<8x128xf32>
      %cst_38 = arith.constant 5.000000e-01 : f32
      %141 = vector.broadcast %cst_38 : f32 to vector<8x128xf32>
      %142 = arith.cmpf ogt, %140, %141 : vector<8x128xf32>
      %143 = arith.andi %142, %68 : vector<8x128xi1>
      %144 = vector.extract_strided_slice %101 {offsets = [7, 0], sizes = [1, 128], strides = [1, 1]} : vector<8x128xf32> to vector<1x128xf32>
      %145 = vector.broadcast %144 : vector<1x128xf32> to vector<8x128xf32>
      %146 = arith.mulf %101, %145 : vector<8x128xf32>
      %cst_39 = arith.constant 5.000000e-01 : f32
      %147 = vector.broadcast %cst_39 : f32 to vector<8x128xf32>
      %148 = arith.cmpf ogt, %146, %147 : vector<8x128xf32>
      %149 = arith.andi %148, %70 : vector<8x128xi1>
      %150 = vector.broadcast %0 : f32 to vector<8x128xf32>
      %151 = arith.mulf %150, %74 : vector<8x128xf32>
      %152 = vector.broadcast %3 : f32 to vector<8x128xf32>
      %153 = arith.mulf %152, %77 : vector<8x128xf32>
      %154 = arith.addf %151, %153 : vector<8x128xf32>
      %155 = vector.broadcast %6 : f32 to vector<8x128xf32>
      %156 = arith.mulf %155, %80 : vector<8x128xf32>
      %157 = arith.addf %154, %156 : vector<8x128xf32>
      %158 = vector.broadcast %18 : f32 to vector<8x128xf32>
      %159 = arith.mulf %158, %83 : vector<8x128xf32>
      %160 = vector.broadcast %21 : f32 to vector<8x128xf32>
      %161 = arith.mulf %160, %86 : vector<8x128xf32>
      %162 = arith.addf %159, %161 : vector<8x128xf32>
      %163 = vector.broadcast %24 : f32 to vector<8x128xf32>
      %164 = arith.mulf %163, %89 : vector<8x128xf32>
      %165 = arith.addf %162, %164 : vector<8x128xf32>
      %cst_40 = arith.constant 0.577350259 : f32
      %166 = vector.broadcast %cst_40 : f32 to vector<8x128xf32>
      %167 = arith.mulf %157, %166 : vector<8x128xf32>
      %168 = vector.broadcast %1 : f32 to vector<8x128xf32>
      %169 = arith.mulf %168, %74 : vector<8x128xf32>
      %170 = vector.broadcast %4 : f32 to vector<8x128xf32>
      %171 = arith.mulf %170, %77 : vector<8x128xf32>
      %172 = arith.addf %169, %171 : vector<8x128xf32>
      %173 = vector.broadcast %7 : f32 to vector<8x128xf32>
      %174 = arith.mulf %173, %80 : vector<8x128xf32>
      %175 = arith.addf %172, %174 : vector<8x128xf32>
      %176 = vector.broadcast %19 : f32 to vector<8x128xf32>
      %177 = arith.mulf %176, %83 : vector<8x128xf32>
      %178 = vector.broadcast %22 : f32 to vector<8x128xf32>
      %179 = arith.mulf %178, %86 : vector<8x128xf32>
      %180 = arith.addf %177, %179 : vector<8x128xf32>
      %181 = vector.broadcast %25 : f32 to vector<8x128xf32>
      %182 = arith.mulf %181, %89 : vector<8x128xf32>
      %183 = arith.addf %180, %182 : vector<8x128xf32>
      %cst_41 = arith.constant 0.577350259 : f32
      %184 = vector.broadcast %cst_41 : f32 to vector<8x128xf32>
      %185 = arith.mulf %175, %184 : vector<8x128xf32>
      %186 = vector.broadcast %2 : f32 to vector<8x128xf32>
      %187 = arith.mulf %186, %74 : vector<8x128xf32>
      %188 = vector.broadcast %5 : f32 to vector<8x128xf32>
      %189 = arith.mulf %188, %77 : vector<8x128xf32>
      %190 = arith.addf %187, %189 : vector<8x128xf32>
      %191 = vector.broadcast %8 : f32 to vector<8x128xf32>
      %192 = arith.mulf %191, %80 : vector<8x128xf32>
      %193 = arith.addf %190, %192 : vector<8x128xf32>
      %194 = vector.broadcast %20 : f32 to vector<8x128xf32>
      %195 = arith.mulf %194, %83 : vector<8x128xf32>
      %196 = vector.broadcast %23 : f32 to vector<8x128xf32>
      %197 = arith.mulf %196, %86 : vector<8x128xf32>
      %198 = arith.addf %195, %197 : vector<8x128xf32>
      %199 = vector.broadcast %26 : f32 to vector<8x128xf32>
      %200 = arith.mulf %199, %89 : vector<8x128xf32>
      %201 = arith.addf %198, %200 : vector<8x128xf32>
      %cst_42 = arith.constant 0.577350259 : f32
      %202 = vector.broadcast %cst_42 : f32 to vector<8x128xf32>
      %203 = arith.mulf %193, %202 : vector<8x128xf32>
      %204 = vector.broadcast %36 : f32 to vector<8x128xf32>
      %205 = arith.mulf %204, %92 : vector<8x128xf32>
      %206 = vector.broadcast %39 : f32 to vector<8x128xf32>
      %207 = arith.mulf %206, %95 : vector<8x128xf32>
      %208 = arith.addf %205, %207 : vector<8x128xf32>
      %209 = vector.broadcast %42 : f32 to vector<8x128xf32>
      %210 = arith.mulf %209, %98 : vector<8x128xf32>
      %211 = arith.addf %208, %210 : vector<8x128xf32>
      %212 = vector.broadcast %37 : f32 to vector<8x128xf32>
      %213 = arith.mulf %212, %92 : vector<8x128xf32>
      %214 = vector.broadcast %40 : f32 to vector<8x128xf32>
      %215 = arith.mulf %214, %95 : vector<8x128xf32>
      %216 = arith.addf %213, %215 : vector<8x128xf32>
      %217 = vector.broadcast %43 : f32 to vector<8x128xf32>
      %218 = arith.mulf %217, %98 : vector<8x128xf32>
      %219 = arith.addf %216, %218 : vector<8x128xf32>
      %220 = vector.broadcast %38 : f32 to vector<8x128xf32>
      %221 = arith.mulf %220, %92 : vector<8x128xf32>
      %222 = vector.broadcast %41 : f32 to vector<8x128xf32>
      %223 = arith.mulf %222, %95 : vector<8x128xf32>
      %224 = arith.addf %221, %223 : vector<8x128xf32>
      %225 = vector.broadcast %44 : f32 to vector<8x128xf32>
      %226 = arith.mulf %225, %98 : vector<8x128xf32>
      %227 = arith.addf %224, %226 : vector<8x128xf32>
      %228 = vector.extract_strided_slice %165 {offsets = [0, 0], sizes = [1, 128], strides = [1, 1]} : vector<8x128xf32> to vector<1x128xf32>
      %229 = vector.broadcast %228 : vector<1x128xf32> to vector<8x128xf32>
      %230 = arith.mulf %167, %229 : vector<8x128xf32>
      %231 = vector.extract_strided_slice %183 {offsets = [0, 0], sizes = [1, 128], strides = [1, 1]} : vector<8x128xf32> to vector<1x128xf32>
      %232 = vector.broadcast %231 : vector<1x128xf32> to vector<8x128xf32>
      %233 = arith.mulf %185, %232 : vector<8x128xf32>
      %234 = arith.addf %230, %233 : vector<8x128xf32>
      %235 = vector.extract_strided_slice %201 {offsets = [0, 0], sizes = [1, 128], strides = [1, 1]} : vector<8x128xf32> to vector<1x128xf32>
      %236 = vector.broadcast %235 : vector<1x128xf32> to vector<8x128xf32>
      %237 = arith.mulf %203, %236 : vector<8x128xf32>
      %238 = arith.addf %234, %237 : vector<8x128xf32>
      %cst_43 = arith.constant -3.40282347E+38 : f32
      %239 = vector.broadcast %cst_43 : f32 to vector<8x128xf32>
      %240 = arith.select %107, %238, %239 : vector<8x128xi1>, vector<8x128xf32>
      %241 = vector.extract_strided_slice %165 {offsets = [1, 0], sizes = [1, 128], strides = [1, 1]} : vector<8x128xf32> to vector<1x128xf32>
      %242 = vector.broadcast %241 : vector<1x128xf32> to vector<8x128xf32>
      %243 = arith.mulf %167, %242 : vector<8x128xf32>
      %244 = vector.extract_strided_slice %183 {offsets = [1, 0], sizes = [1, 128], strides = [1, 1]} : vector<8x128xf32> to vector<1x128xf32>
      %245 = vector.broadcast %244 : vector<1x128xf32> to vector<8x128xf32>
      %246 = arith.mulf %185, %245 : vector<8x128xf32>
      %247 = arith.addf %243, %246 : vector<8x128xf32>
      %248 = vector.extract_strided_slice %201 {offsets = [1, 0], sizes = [1, 128], strides = [1, 1]} : vector<8x128xf32> to vector<1x128xf32>
      %249 = vector.broadcast %248 : vector<1x128xf32> to vector<8x128xf32>
      %250 = arith.mulf %203, %249 : vector<8x128xf32>
      %251 = arith.addf %247, %250 : vector<8x128xf32>
      %cst_44 = arith.constant -3.40282347E+38 : f32
      %252 = vector.broadcast %cst_44 : f32 to vector<8x128xf32>
      %253 = arith.select %113, %251, %252 : vector<8x128xi1>, vector<8x128xf32>
      %254 = vector.extract_strided_slice %165 {offsets = [2, 0], sizes = [1, 128], strides = [1, 1]} : vector<8x128xf32> to vector<1x128xf32>
      %255 = vector.broadcast %254 : vector<1x128xf32> to vector<8x128xf32>
      %256 = arith.mulf %167, %255 : vector<8x128xf32>
      %257 = vector.extract_strided_slice %183 {offsets = [2, 0], sizes = [1, 128], strides = [1, 1]} : vector<8x128xf32> to vector<1x128xf32>
      %258 = vector.broadcast %257 : vector<1x128xf32> to vector<8x128xf32>
      %259 = arith.mulf %185, %258 : vector<8x128xf32>
      %260 = arith.addf %256, %259 : vector<8x128xf32>
      %261 = vector.extract_strided_slice %201 {offsets = [2, 0], sizes = [1, 128], strides = [1, 1]} : vector<8x128xf32> to vector<1x128xf32>
      %262 = vector.broadcast %261 : vector<1x128xf32> to vector<8x128xf32>
      %263 = arith.mulf %203, %262 : vector<8x128xf32>
      %264 = arith.addf %260, %263 : vector<8x128xf32>
      %cst_45 = arith.constant -3.40282347E+38 : f32
      %265 = vector.broadcast %cst_45 : f32 to vector<8x128xf32>
      %266 = arith.select %119, %264, %265 : vector<8x128xi1>, vector<8x128xf32>
      %267 = vector.extract_strided_slice %165 {offsets = [3, 0], sizes = [1, 128], strides = [1, 1]} : vector<8x128xf32> to vector<1x128xf32>
      %268 = vector.broadcast %267 : vector<1x128xf32> to vector<8x128xf32>
      %269 = arith.mulf %167, %268 : vector<8x128xf32>
      %270 = vector.extract_strided_slice %183 {offsets = [3, 0], sizes = [1, 128], strides = [1, 1]} : vector<8x128xf32> to vector<1x128xf32>
      %271 = vector.broadcast %270 : vector<1x128xf32> to vector<8x128xf32>
      %272 = arith.mulf %185, %271 : vector<8x128xf32>
      %273 = arith.addf %269, %272 : vector<8x128xf32>
      %274 = vector.extract_strided_slice %201 {offsets = [3, 0], sizes = [1, 128], strides = [1, 1]} : vector<8x128xf32> to vector<1x128xf32>
      %275 = vector.broadcast %274 : vector<1x128xf32> to vector<8x128xf32>
      %276 = arith.mulf %203, %275 : vector<8x128xf32>
      %277 = arith.addf %273, %276 : vector<8x128xf32>
      %cst_46 = arith.constant -3.40282347E+38 : f32
      %278 = vector.broadcast %cst_46 : f32 to vector<8x128xf32>
      %279 = arith.select %125, %277, %278 : vector<8x128xi1>, vector<8x128xf32>
      %280 = vector.extract_strided_slice %165 {offsets = [4, 0], sizes = [1, 128], strides = [1, 1]} : vector<8x128xf32> to vector<1x128xf32>
      %281 = vector.broadcast %280 : vector<1x128xf32> to vector<8x128xf32>
      %282 = arith.mulf %167, %281 : vector<8x128xf32>
      %283 = vector.extract_strided_slice %183 {offsets = [4, 0], sizes = [1, 128], strides = [1, 1]} : vector<8x128xf32> to vector<1x128xf32>
      %284 = vector.broadcast %283 : vector<1x128xf32> to vector<8x128xf32>
      %285 = arith.mulf %185, %284 : vector<8x128xf32>
      %286 = arith.addf %282, %285 : vector<8x128xf32>
      %287 = vector.extract_strided_slice %201 {offsets = [4, 0], sizes = [1, 128], strides = [1, 1]} : vector<8x128xf32> to vector<1x128xf32>
      %288 = vector.broadcast %287 : vector<1x128xf32> to vector<8x128xf32>
      %289 = arith.mulf %203, %288 : vector<8x128xf32>
      %290 = arith.addf %286, %289 : vector<8x128xf32>
      %cst_47 = arith.constant -3.40282347E+38 : f32
      %291 = vector.broadcast %cst_47 : f32 to vector<8x128xf32>
      %292 = arith.select %131, %290, %291 : vector<8x128xi1>, vector<8x128xf32>
      %293 = vector.extract_strided_slice %165 {offsets = [5, 0], sizes = [1, 128], strides = [1, 1]} : vector<8x128xf32> to vector<1x128xf32>
      %294 = vector.broadcast %293 : vector<1x128xf32> to vector<8x128xf32>
      %295 = arith.mulf %167, %294 : vector<8x128xf32>
      %296 = vector.extract_strided_slice %183 {offsets = [5, 0], sizes = [1, 128], strides = [1, 1]} : vector<8x128xf32> to vector<1x128xf32>
      %297 = vector.broadcast %296 : vector<1x128xf32> to vector<8x128xf32>
      %298 = arith.mulf %185, %297 : vector<8x128xf32>
      %299 = arith.addf %295, %298 : vector<8x128xf32>
      %300 = vector.extract_strided_slice %201 {offsets = [5, 0], sizes = [1, 128], strides = [1, 1]} : vector<8x128xf32> to vector<1x128xf32>
      %301 = vector.broadcast %300 : vector<1x128xf32> to vector<8x128xf32>
      %302 = arith.mulf %203, %301 : vector<8x128xf32>
      %303 = arith.addf %299, %302 : vector<8x128xf32>
      %cst_48 = arith.constant -3.40282347E+38 : f32
      %304 = vector.broadcast %cst_48 : f32 to vector<8x128xf32>
      %305 = arith.select %137, %303, %304 : vector<8x128xi1>, vector<8x128xf32>
      %306 = vector.extract_strided_slice %165 {offsets = [6, 0], sizes = [1, 128], strides = [1, 1]} : vector<8x128xf32> to vector<1x128xf32>
      %307 = vector.broadcast %306 : vector<1x128xf32> to vector<8x128xf32>
      %308 = arith.mulf %167, %307 : vector<8x128xf32>
      %309 = vector.extract_strided_slice %183 {offsets = [6, 0], sizes = [1, 128], strides = [1, 1]} : vector<8x128xf32> to vector<1x128xf32>
      %310 = vector.broadcast %309 : vector<1x128xf32> to vector<8x128xf32>
      %311 = arith.mulf %185, %310 : vector<8x128xf32>
      %312 = arith.addf %308, %311 : vector<8x128xf32>
      %313 = vector.extract_strided_slice %201 {offsets = [6, 0], sizes = [1, 128], strides = [1, 1]} : vector<8x128xf32> to vector<1x128xf32>
      %314 = vector.broadcast %313 : vector<1x128xf32> to vector<8x128xf32>
      %315 = arith.mulf %203, %314 : vector<8x128xf32>
      %316 = arith.addf %312, %315 : vector<8x128xf32>
      %cst_49 = arith.constant -3.40282347E+38 : f32
      %317 = vector.broadcast %cst_49 : f32 to vector<8x128xf32>
      %318 = arith.select %143, %316, %317 : vector<8x128xi1>, vector<8x128xf32>
      %319 = vector.extract_strided_slice %165 {offsets = [7, 0], sizes = [1, 128], strides = [1, 1]} : vector<8x128xf32> to vector<1x128xf32>
      %320 = vector.broadcast %319 : vector<1x128xf32> to vector<8x128xf32>
      %321 = arith.mulf %167, %320 : vector<8x128xf32>
      %322 = vector.extract_strided_slice %183 {offsets = [7, 0], sizes = [1, 128], strides = [1, 1]} : vector<8x128xf32> to vector<1x128xf32>
      %323 = vector.broadcast %322 : vector<1x128xf32> to vector<8x128xf32>
      %324 = arith.mulf %185, %323 : vector<8x128xf32>
      %325 = arith.addf %321, %324 : vector<8x128xf32>
      %326 = vector.extract_strided_slice %201 {offsets = [7, 0], sizes = [1, 128], strides = [1, 1]} : vector<8x128xf32> to vector<1x128xf32>
      %327 = vector.broadcast %326 : vector<1x128xf32> to vector<8x128xf32>
      %328 = arith.mulf %203, %327 : vector<8x128xf32>
      %329 = arith.addf %325, %328 : vector<8x128xf32>
      %cst_50 = arith.constant -3.40282347E+38 : f32
      %330 = vector.broadcast %cst_50 : f32 to vector<8x128xf32>
      %331 = arith.select %149, %329, %330 : vector<8x128xi1>, vector<8x128xf32>
      %332 = arith.maximumf %240, %253 : vector<8x128xf32>
      %333 = arith.maximumf %332, %266 : vector<8x128xf32>
      %334 = arith.maximumf %333, %279 : vector<8x128xf32>
      %335 = arith.maximumf %334, %292 : vector<8x128xf32>
      %336 = arith.maximumf %335, %305 : vector<8x128xf32>
      %337 = arith.maximumf %336, %318 : vector<8x128xf32>
      %338 = arith.maximumf %337, %331 : vector<8x128xf32>
      %339 = arith.subf %240, %338 : vector<8x128xf32>
      %340 = math.exp %339 : vector<8x128xf32>
      %341 = arith.subf %253, %338 : vector<8x128xf32>
      %342 = math.exp %341 : vector<8x128xf32>
      %343 = arith.subf %266, %338 : vector<8x128xf32>
      %344 = math.exp %343 : vector<8x128xf32>
      %345 = arith.subf %279, %338 : vector<8x128xf32>
      %346 = math.exp %345 : vector<8x128xf32>
      %347 = arith.subf %292, %338 : vector<8x128xf32>
      %348 = math.exp %347 : vector<8x128xf32>
      %349 = arith.subf %305, %338 : vector<8x128xf32>
      %350 = math.exp %349 : vector<8x128xf32>
      %351 = arith.subf %318, %338 : vector<8x128xf32>
      %352 = math.exp %351 : vector<8x128xf32>
      %353 = arith.subf %331, %338 : vector<8x128xf32>
      %354 = math.exp %353 : vector<8x128xf32>
      %355 = arith.addf %340, %342 : vector<8x128xf32>
      %356 = arith.addf %355, %344 : vector<8x128xf32>
      %357 = arith.addf %356, %346 : vector<8x128xf32>
      %358 = arith.addf %357, %348 : vector<8x128xf32>
      %359 = arith.addf %358, %350 : vector<8x128xf32>
      %360 = arith.addf %359, %352 : vector<8x128xf32>
      %361 = arith.addf %360, %354 : vector<8x128xf32>
      %362 = tpu.reciprocal %361 {approx = true} : vector<8x128xf32> -> vector<8x128xf32>
      %363 = arith.mulf %361, %362 : vector<8x128xf32>
      %cst_51 = arith.constant 2.000000e+00 : f32
      %364 = vector.broadcast %cst_51 : f32 to vector<8x128xf32>
      %365 = arith.subf %364, %363 : vector<8x128xf32>
      %366 = arith.mulf %362, %365 : vector<8x128xf32>
      %367 = vector.extract_strided_slice %211 {offsets = [0, 0], sizes = [1, 128], strides = [1, 1]} : vector<8x128xf32> to vector<1x128xf32>
      %368 = vector.broadcast %367 : vector<1x128xf32> to vector<8x128xf32>
      %369 = arith.mulf %340, %368 : vector<8x128xf32>
      %370 = vector.extract_strided_slice %219 {offsets = [0, 0], sizes = [1, 128], strides = [1, 1]} : vector<8x128xf32> to vector<1x128xf32>
      %371 = vector.broadcast %370 : vector<1x128xf32> to vector<8x128xf32>
      %372 = arith.mulf %340, %371 : vector<8x128xf32>
      %373 = vector.extract_strided_slice %227 {offsets = [0, 0], sizes = [1, 128], strides = [1, 1]} : vector<8x128xf32> to vector<1x128xf32>
      %374 = vector.broadcast %373 : vector<1x128xf32> to vector<8x128xf32>
      %375 = arith.mulf %340, %374 : vector<8x128xf32>
      %376 = vector.extract_strided_slice %211 {offsets = [1, 0], sizes = [1, 128], strides = [1, 1]} : vector<8x128xf32> to vector<1x128xf32>
      %377 = vector.broadcast %376 : vector<1x128xf32> to vector<8x128xf32>
      %378 = arith.mulf %342, %377 : vector<8x128xf32>
      %379 = arith.addf %369, %378 : vector<8x128xf32>
      %380 = vector.extract_strided_slice %219 {offsets = [1, 0], sizes = [1, 128], strides = [1, 1]} : vector<8x128xf32> to vector<1x128xf32>
      %381 = vector.broadcast %380 : vector<1x128xf32> to vector<8x128xf32>
      %382 = arith.mulf %342, %381 : vector<8x128xf32>
      %383 = arith.addf %372, %382 : vector<8x128xf32>
      %384 = vector.extract_strided_slice %227 {offsets = [1, 0], sizes = [1, 128], strides = [1, 1]} : vector<8x128xf32> to vector<1x128xf32>
      %385 = vector.broadcast %384 : vector<1x128xf32> to vector<8x128xf32>
      %386 = arith.mulf %342, %385 : vector<8x128xf32>
      %387 = arith.addf %375, %386 : vector<8x128xf32>
      %388 = vector.extract_strided_slice %211 {offsets = [2, 0], sizes = [1, 128], strides = [1, 1]} : vector<8x128xf32> to vector<1x128xf32>
      %389 = vector.broadcast %388 : vector<1x128xf32> to vector<8x128xf32>
      %390 = arith.mulf %344, %389 : vector<8x128xf32>
      %391 = arith.addf %379, %390 : vector<8x128xf32>
      %392 = vector.extract_strided_slice %219 {offsets = [2, 0], sizes = [1, 128], strides = [1, 1]} : vector<8x128xf32> to vector<1x128xf32>
      %393 = vector.broadcast %392 : vector<1x128xf32> to vector<8x128xf32>
      %394 = arith.mulf %344, %393 : vector<8x128xf32>
      %395 = arith.addf %383, %394 : vector<8x128xf32>
      %396 = vector.extract_strided_slice %227 {offsets = [2, 0], sizes = [1, 128], strides = [1, 1]} : vector<8x128xf32> to vector<1x128xf32>
      %397 = vector.broadcast %396 : vector<1x128xf32> to vector<8x128xf32>
      %398 = arith.mulf %344, %397 : vector<8x128xf32>
      %399 = arith.addf %387, %398 : vector<8x128xf32>
      %400 = vector.extract_strided_slice %211 {offsets = [3, 0], sizes = [1, 128], strides = [1, 1]} : vector<8x128xf32> to vector<1x128xf32>
      %401 = vector.broadcast %400 : vector<1x128xf32> to vector<8x128xf32>
      %402 = arith.mulf %346, %401 : vector<8x128xf32>
      %403 = arith.addf %391, %402 : vector<8x128xf32>
      %404 = vector.extract_strided_slice %219 {offsets = [3, 0], sizes = [1, 128], strides = [1, 1]} : vector<8x128xf32> to vector<1x128xf32>
      %405 = vector.broadcast %404 : vector<1x128xf32> to vector<8x128xf32>
      %406 = arith.mulf %346, %405 : vector<8x128xf32>
      %407 = arith.addf %395, %406 : vector<8x128xf32>
      %408 = vector.extract_strided_slice %227 {offsets = [3, 0], sizes = [1, 128], strides = [1, 1]} : vector<8x128xf32> to vector<1x128xf32>
      %409 = vector.broadcast %408 : vector<1x128xf32> to vector<8x128xf32>
      %410 = arith.mulf %346, %409 : vector<8x128xf32>
      %411 = arith.addf %399, %410 : vector<8x128xf32>
      %412 = vector.extract_strided_slice %211 {offsets = [4, 0], sizes = [1, 128], strides = [1, 1]} : vector<8x128xf32> to vector<1x128xf32>
      %413 = vector.broadcast %412 : vector<1x128xf32> to vector<8x128xf32>
      %414 = arith.mulf %348, %413 : vector<8x128xf32>
      %415 = arith.addf %403, %414 : vector<8x128xf32>
      %416 = vector.extract_strided_slice %219 {offsets = [4, 0], sizes = [1, 128], strides = [1, 1]} : vector<8x128xf32> to vector<1x128xf32>
      %417 = vector.broadcast %416 : vector<1x128xf32> to vector<8x128xf32>
      %418 = arith.mulf %348, %417 : vector<8x128xf32>
      %419 = arith.addf %407, %418 : vector<8x128xf32>
      %420 = vector.extract_strided_slice %227 {offsets = [4, 0], sizes = [1, 128], strides = [1, 1]} : vector<8x128xf32> to vector<1x128xf32>
      %421 = vector.broadcast %420 : vector<1x128xf32> to vector<8x128xf32>
      %422 = arith.mulf %348, %421 : vector<8x128xf32>
      %423 = arith.addf %411, %422 : vector<8x128xf32>
      %424 = vector.extract_strided_slice %211 {offsets = [5, 0], sizes = [1, 128], strides = [1, 1]} : vector<8x128xf32> to vector<1x128xf32>
      %425 = vector.broadcast %424 : vector<1x128xf32> to vector<8x128xf32>
      %426 = arith.mulf %350, %425 : vector<8x128xf32>
      %427 = arith.addf %415, %426 : vector<8x128xf32>
      %428 = vector.extract_strided_slice %219 {offsets = [5, 0], sizes = [1, 128], strides = [1, 1]} : vector<8x128xf32> to vector<1x128xf32>
      %429 = vector.broadcast %428 : vector<1x128xf32> to vector<8x128xf32>
      %430 = arith.mulf %350, %429 : vector<8x128xf32>
      %431 = arith.addf %419, %430 : vector<8x128xf32>
      %432 = vector.extract_strided_slice %227 {offsets = [5, 0], sizes = [1, 128], strides = [1, 1]} : vector<8x128xf32> to vector<1x128xf32>
      %433 = vector.broadcast %432 : vector<1x128xf32> to vector<8x128xf32>
      %434 = arith.mulf %350, %433 : vector<8x128xf32>
      %435 = arith.addf %423, %434 : vector<8x128xf32>
      %436 = vector.extract_strided_slice %211 {offsets = [6, 0], sizes = [1, 128], strides = [1, 1]} : vector<8x128xf32> to vector<1x128xf32>
      %437 = vector.broadcast %436 : vector<1x128xf32> to vector<8x128xf32>
      %438 = arith.mulf %352, %437 : vector<8x128xf32>
      %439 = arith.addf %427, %438 : vector<8x128xf32>
      %440 = vector.extract_strided_slice %219 {offsets = [6, 0], sizes = [1, 128], strides = [1, 1]} : vector<8x128xf32> to vector<1x128xf32>
      %441 = vector.broadcast %440 : vector<1x128xf32> to vector<8x128xf32>
      %442 = arith.mulf %352, %441 : vector<8x128xf32>
      %443 = arith.addf %431, %442 : vector<8x128xf32>
      %444 = vector.extract_strided_slice %227 {offsets = [6, 0], sizes = [1, 128], strides = [1, 1]} : vector<8x128xf32> to vector<1x128xf32>
      %445 = vector.broadcast %444 : vector<1x128xf32> to vector<8x128xf32>
      %446 = arith.mulf %352, %445 : vector<8x128xf32>
      %447 = arith.addf %435, %446 : vector<8x128xf32>
      %448 = vector.extract_strided_slice %211 {offsets = [7, 0], sizes = [1, 128], strides = [1, 1]} : vector<8x128xf32> to vector<1x128xf32>
      %449 = vector.broadcast %448 : vector<1x128xf32> to vector<8x128xf32>
      %450 = arith.mulf %354, %449 : vector<8x128xf32>
      %451 = arith.addf %439, %450 : vector<8x128xf32>
      %452 = vector.extract_strided_slice %219 {offsets = [7, 0], sizes = [1, 128], strides = [1, 1]} : vector<8x128xf32> to vector<1x128xf32>
      %453 = vector.broadcast %452 : vector<1x128xf32> to vector<8x128xf32>
      %454 = arith.mulf %354, %453 : vector<8x128xf32>
      %455 = arith.addf %443, %454 : vector<8x128xf32>
      %456 = vector.extract_strided_slice %227 {offsets = [7, 0], sizes = [1, 128], strides = [1, 1]} : vector<8x128xf32> to vector<1x128xf32>
      %457 = vector.broadcast %456 : vector<1x128xf32> to vector<8x128xf32>
      %458 = arith.mulf %354, %457 : vector<8x128xf32>
      %459 = arith.addf %447, %458 : vector<8x128xf32>
      %460 = arith.mulf %451, %366 : vector<8x128xf32>
      %461 = arith.mulf %455, %366 : vector<8x128xf32>
      %462 = arith.mulf %459, %366 : vector<8x128xf32>
      %463 = vector.broadcast %9 : f32 to vector<8x128xf32>
      %464 = arith.mulf %463, %74 : vector<8x128xf32>
      %465 = vector.broadcast %12 : f32 to vector<8x128xf32>
      %466 = arith.mulf %465, %77 : vector<8x128xf32>
      %467 = arith.addf %464, %466 : vector<8x128xf32>
      %468 = vector.broadcast %15 : f32 to vector<8x128xf32>
      %469 = arith.mulf %468, %80 : vector<8x128xf32>
      %470 = arith.addf %467, %469 : vector<8x128xf32>
      %471 = vector.broadcast %27 : f32 to vector<8x128xf32>
      %472 = arith.mulf %471, %83 : vector<8x128xf32>
      %473 = vector.broadcast %30 : f32 to vector<8x128xf32>
      %474 = arith.mulf %473, %86 : vector<8x128xf32>
      %475 = arith.addf %472, %474 : vector<8x128xf32>
      %476 = vector.broadcast %33 : f32 to vector<8x128xf32>
      %477 = arith.mulf %476, %89 : vector<8x128xf32>
      %478 = arith.addf %475, %477 : vector<8x128xf32>
      %cst_52 = arith.constant 0.577350259 : f32
      %479 = vector.broadcast %cst_52 : f32 to vector<8x128xf32>
      %480 = arith.mulf %470, %479 : vector<8x128xf32>
      %481 = vector.broadcast %10 : f32 to vector<8x128xf32>
      %482 = arith.mulf %481, %74 : vector<8x128xf32>
      %483 = vector.broadcast %13 : f32 to vector<8x128xf32>
      %484 = arith.mulf %483, %77 : vector<8x128xf32>
      %485 = arith.addf %482, %484 : vector<8x128xf32>
      %486 = vector.broadcast %16 : f32 to vector<8x128xf32>
      %487 = arith.mulf %486, %80 : vector<8x128xf32>
      %488 = arith.addf %485, %487 : vector<8x128xf32>
      %489 = vector.broadcast %28 : f32 to vector<8x128xf32>
      %490 = arith.mulf %489, %83 : vector<8x128xf32>
      %491 = vector.broadcast %31 : f32 to vector<8x128xf32>
      %492 = arith.mulf %491, %86 : vector<8x128xf32>
      %493 = arith.addf %490, %492 : vector<8x128xf32>
      %494 = vector.broadcast %34 : f32 to vector<8x128xf32>
      %495 = arith.mulf %494, %89 : vector<8x128xf32>
      %496 = arith.addf %493, %495 : vector<8x128xf32>
      %cst_53 = arith.constant 0.577350259 : f32
      %497 = vector.broadcast %cst_53 : f32 to vector<8x128xf32>
      %498 = arith.mulf %488, %497 : vector<8x128xf32>
      %499 = vector.broadcast %11 : f32 to vector<8x128xf32>
      %500 = arith.mulf %499, %74 : vector<8x128xf32>
      %501 = vector.broadcast %14 : f32 to vector<8x128xf32>
      %502 = arith.mulf %501, %77 : vector<8x128xf32>
      %503 = arith.addf %500, %502 : vector<8x128xf32>
      %504 = vector.broadcast %17 : f32 to vector<8x128xf32>
      %505 = arith.mulf %504, %80 : vector<8x128xf32>
      %506 = arith.addf %503, %505 : vector<8x128xf32>
      %507 = vector.broadcast %29 : f32 to vector<8x128xf32>
      %508 = arith.mulf %507, %83 : vector<8x128xf32>
      %509 = vector.broadcast %32 : f32 to vector<8x128xf32>
      %510 = arith.mulf %509, %86 : vector<8x128xf32>
      %511 = arith.addf %508, %510 : vector<8x128xf32>
      %512 = vector.broadcast %35 : f32 to vector<8x128xf32>
      %513 = arith.mulf %512, %89 : vector<8x128xf32>
      %514 = arith.addf %511, %513 : vector<8x128xf32>
      %cst_54 = arith.constant 0.577350259 : f32
      %515 = vector.broadcast %cst_54 : f32 to vector<8x128xf32>
      %516 = arith.mulf %506, %515 : vector<8x128xf32>
      %517 = vector.broadcast %45 : f32 to vector<8x128xf32>
      %518 = arith.mulf %517, %92 : vector<8x128xf32>
      %519 = vector.broadcast %48 : f32 to vector<8x128xf32>
      %520 = arith.mulf %519, %95 : vector<8x128xf32>
      %521 = arith.addf %518, %520 : vector<8x128xf32>
      %522 = vector.broadcast %51 : f32 to vector<8x128xf32>
      %523 = arith.mulf %522, %98 : vector<8x128xf32>
      %524 = arith.addf %521, %523 : vector<8x128xf32>
      %525 = vector.broadcast %46 : f32 to vector<8x128xf32>
      %526 = arith.mulf %525, %92 : vector<8x128xf32>
      %527 = vector.broadcast %49 : f32 to vector<8x128xf32>
      %528 = arith.mulf %527, %95 : vector<8x128xf32>
      %529 = arith.addf %526, %528 : vector<8x128xf32>
      %530 = vector.broadcast %52 : f32 to vector<8x128xf32>
      %531 = arith.mulf %530, %98 : vector<8x128xf32>
      %532 = arith.addf %529, %531 : vector<8x128xf32>
      %533 = vector.broadcast %47 : f32 to vector<8x128xf32>
      %534 = arith.mulf %533, %92 : vector<8x128xf32>
      %535 = vector.broadcast %50 : f32 to vector<8x128xf32>
      %536 = arith.mulf %535, %95 : vector<8x128xf32>
      %537 = arith.addf %534, %536 : vector<8x128xf32>
      %538 = vector.broadcast %53 : f32 to vector<8x128xf32>
      %539 = arith.mulf %538, %98 : vector<8x128xf32>
      %540 = arith.addf %537, %539 : vector<8x128xf32>
      %541 = vector.extract_strided_slice %478 {offsets = [0, 0], sizes = [1, 128], strides = [1, 1]} : vector<8x128xf32> to vector<1x128xf32>
      %542 = vector.broadcast %541 : vector<1x128xf32> to vector<8x128xf32>
      %543 = arith.mulf %480, %542 : vector<8x128xf32>
      %544 = vector.extract_strided_slice %496 {offsets = [0, 0], sizes = [1, 128], strides = [1, 1]} : vector<8x128xf32> to vector<1x128xf32>
      %545 = vector.broadcast %544 : vector<1x128xf32> to vector<8x128xf32>
      %546 = arith.mulf %498, %545 : vector<8x128xf32>
      %547 = arith.addf %543, %546 : vector<8x128xf32>
      %548 = vector.extract_strided_slice %514 {offsets = [0, 0], sizes = [1, 128], strides = [1, 1]} : vector<8x128xf32> to vector<1x128xf32>
      %549 = vector.broadcast %548 : vector<1x128xf32> to vector<8x128xf32>
      %550 = arith.mulf %516, %549 : vector<8x128xf32>
      %551 = arith.addf %547, %550 : vector<8x128xf32>
      %cst_55 = arith.constant -3.40282347E+38 : f32
      %552 = vector.broadcast %cst_55 : f32 to vector<8x128xf32>
      %553 = arith.select %107, %551, %552 : vector<8x128xi1>, vector<8x128xf32>
      %554 = vector.extract_strided_slice %478 {offsets = [1, 0], sizes = [1, 128], strides = [1, 1]} : vector<8x128xf32> to vector<1x128xf32>
      %555 = vector.broadcast %554 : vector<1x128xf32> to vector<8x128xf32>
      %556 = arith.mulf %480, %555 : vector<8x128xf32>
      %557 = vector.extract_strided_slice %496 {offsets = [1, 0], sizes = [1, 128], strides = [1, 1]} : vector<8x128xf32> to vector<1x128xf32>
      %558 = vector.broadcast %557 : vector<1x128xf32> to vector<8x128xf32>
      %559 = arith.mulf %498, %558 : vector<8x128xf32>
      %560 = arith.addf %556, %559 : vector<8x128xf32>
      %561 = vector.extract_strided_slice %514 {offsets = [1, 0], sizes = [1, 128], strides = [1, 1]} : vector<8x128xf32> to vector<1x128xf32>
      %562 = vector.broadcast %561 : vector<1x128xf32> to vector<8x128xf32>
      %563 = arith.mulf %516, %562 : vector<8x128xf32>
      %564 = arith.addf %560, %563 : vector<8x128xf32>
      %cst_56 = arith.constant -3.40282347E+38 : f32
      %565 = vector.broadcast %cst_56 : f32 to vector<8x128xf32>
      %566 = arith.select %113, %564, %565 : vector<8x128xi1>, vector<8x128xf32>
      %567 = vector.extract_strided_slice %478 {offsets = [2, 0], sizes = [1, 128], strides = [1, 1]} : vector<8x128xf32> to vector<1x128xf32>
      %568 = vector.broadcast %567 : vector<1x128xf32> to vector<8x128xf32>
      %569 = arith.mulf %480, %568 : vector<8x128xf32>
      %570 = vector.extract_strided_slice %496 {offsets = [2, 0], sizes = [1, 128], strides = [1, 1]} : vector<8x128xf32> to vector<1x128xf32>
      %571 = vector.broadcast %570 : vector<1x128xf32> to vector<8x128xf32>
      %572 = arith.mulf %498, %571 : vector<8x128xf32>
      %573 = arith.addf %569, %572 : vector<8x128xf32>
      %574 = vector.extract_strided_slice %514 {offsets = [2, 0], sizes = [1, 128], strides = [1, 1]} : vector<8x128xf32> to vector<1x128xf32>
      %575 = vector.broadcast %574 : vector<1x128xf32> to vector<8x128xf32>
      %576 = arith.mulf %516, %575 : vector<8x128xf32>
      %577 = arith.addf %573, %576 : vector<8x128xf32>
      %cst_57 = arith.constant -3.40282347E+38 : f32
      %578 = vector.broadcast %cst_57 : f32 to vector<8x128xf32>
      %579 = arith.select %119, %577, %578 : vector<8x128xi1>, vector<8x128xf32>
      %580 = vector.extract_strided_slice %478 {offsets = [3, 0], sizes = [1, 128], strides = [1, 1]} : vector<8x128xf32> to vector<1x128xf32>
      %581 = vector.broadcast %580 : vector<1x128xf32> to vector<8x128xf32>
      %582 = arith.mulf %480, %581 : vector<8x128xf32>
      %583 = vector.extract_strided_slice %496 {offsets = [3, 0], sizes = [1, 128], strides = [1, 1]} : vector<8x128xf32> to vector<1x128xf32>
      %584 = vector.broadcast %583 : vector<1x128xf32> to vector<8x128xf32>
      %585 = arith.mulf %498, %584 : vector<8x128xf32>
      %586 = arith.addf %582, %585 : vector<8x128xf32>
      %587 = vector.extract_strided_slice %514 {offsets = [3, 0], sizes = [1, 128], strides = [1, 1]} : vector<8x128xf32> to vector<1x128xf32>
      %588 = vector.broadcast %587 : vector<1x128xf32> to vector<8x128xf32>
      %589 = arith.mulf %516, %588 : vector<8x128xf32>
      %590 = arith.addf %586, %589 : vector<8x128xf32>
      %cst_58 = arith.constant -3.40282347E+38 : f32
      %591 = vector.broadcast %cst_58 : f32 to vector<8x128xf32>
      %592 = arith.select %125, %590, %591 : vector<8x128xi1>, vector<8x128xf32>
      %593 = vector.extract_strided_slice %478 {offsets = [4, 0], sizes = [1, 128], strides = [1, 1]} : vector<8x128xf32> to vector<1x128xf32>
      %594 = vector.broadcast %593 : vector<1x128xf32> to vector<8x128xf32>
      %595 = arith.mulf %480, %594 : vector<8x128xf32>
      %596 = vector.extract_strided_slice %496 {offsets = [4, 0], sizes = [1, 128], strides = [1, 1]} : vector<8x128xf32> to vector<1x128xf32>
      %597 = vector.broadcast %596 : vector<1x128xf32> to vector<8x128xf32>
      %598 = arith.mulf %498, %597 : vector<8x128xf32>
      %599 = arith.addf %595, %598 : vector<8x128xf32>
      %600 = vector.extract_strided_slice %514 {offsets = [4, 0], sizes = [1, 128], strides = [1, 1]} : vector<8x128xf32> to vector<1x128xf32>
      %601 = vector.broadcast %600 : vector<1x128xf32> to vector<8x128xf32>
      %602 = arith.mulf %516, %601 : vector<8x128xf32>
      %603 = arith.addf %599, %602 : vector<8x128xf32>
      %cst_59 = arith.constant -3.40282347E+38 : f32
      %604 = vector.broadcast %cst_59 : f32 to vector<8x128xf32>
      %605 = arith.select %131, %603, %604 : vector<8x128xi1>, vector<8x128xf32>
      %606 = vector.extract_strided_slice %478 {offsets = [5, 0], sizes = [1, 128], strides = [1, 1]} : vector<8x128xf32> to vector<1x128xf32>
      %607 = vector.broadcast %606 : vector<1x128xf32> to vector<8x128xf32>
      %608 = arith.mulf %480, %607 : vector<8x128xf32>
      %609 = vector.extract_strided_slice %496 {offsets = [5, 0], sizes = [1, 128], strides = [1, 1]} : vector<8x128xf32> to vector<1x128xf32>
      %610 = vector.broadcast %609 : vector<1x128xf32> to vector<8x128xf32>
      %611 = arith.mulf %498, %610 : vector<8x128xf32>
      %612 = arith.addf %608, %611 : vector<8x128xf32>
      %613 = vector.extract_strided_slice %514 {offsets = [5, 0], sizes = [1, 128], strides = [1, 1]} : vector<8x128xf32> to vector<1x128xf32>
      %614 = vector.broadcast %613 : vector<1x128xf32> to vector<8x128xf32>
      %615 = arith.mulf %516, %614 : vector<8x128xf32>
      %616 = arith.addf %612, %615 : vector<8x128xf32>
      %cst_60 = arith.constant -3.40282347E+38 : f32
      %617 = vector.broadcast %cst_60 : f32 to vector<8x128xf32>
      %618 = arith.select %137, %616, %617 : vector<8x128xi1>, vector<8x128xf32>
      %619 = vector.extract_strided_slice %478 {offsets = [6, 0], sizes = [1, 128], strides = [1, 1]} : vector<8x128xf32> to vector<1x128xf32>
      %620 = vector.broadcast %619 : vector<1x128xf32> to vector<8x128xf32>
      %621 = arith.mulf %480, %620 : vector<8x128xf32>
      %622 = vector.extract_strided_slice %496 {offsets = [6, 0], sizes = [1, 128], strides = [1, 1]} : vector<8x128xf32> to vector<1x128xf32>
      %623 = vector.broadcast %622 : vector<1x128xf32> to vector<8x128xf32>
      %624 = arith.mulf %498, %623 : vector<8x128xf32>
      %625 = arith.addf %621, %624 : vector<8x128xf32>
      %626 = vector.extract_strided_slice %514 {offsets = [6, 0], sizes = [1, 128], strides = [1, 1]} : vector<8x128xf32> to vector<1x128xf32>
      %627 = vector.broadcast %626 : vector<1x128xf32> to vector<8x128xf32>
      %628 = arith.mulf %516, %627 : vector<8x128xf32>
      %629 = arith.addf %625, %628 : vector<8x128xf32>
      %cst_61 = arith.constant -3.40282347E+38 : f32
      %630 = vector.broadcast %cst_61 : f32 to vector<8x128xf32>
      %631 = arith.select %143, %629, %630 : vector<8x128xi1>, vector<8x128xf32>
      %632 = vector.extract_strided_slice %478 {offsets = [7, 0], sizes = [1, 128], strides = [1, 1]} : vector<8x128xf32> to vector<1x128xf32>
      %633 = vector.broadcast %632 : vector<1x128xf32> to vector<8x128xf32>
      %634 = arith.mulf %480, %633 : vector<8x128xf32>
      %635 = vector.extract_strided_slice %496 {offsets = [7, 0], sizes = [1, 128], strides = [1, 1]} : vector<8x128xf32> to vector<1x128xf32>
      %636 = vector.broadcast %635 : vector<1x128xf32> to vector<8x128xf32>
      %637 = arith.mulf %498, %636 : vector<8x128xf32>
      %638 = arith.addf %634, %637 : vector<8x128xf32>
      %639 = vector.extract_strided_slice %514 {offsets = [7, 0], sizes = [1, 128], strides = [1, 1]} : vector<8x128xf32> to vector<1x128xf32>
      %640 = vector.broadcast %639 : vector<1x128xf32> to vector<8x128xf32>
      %641 = arith.mulf %516, %640 : vector<8x128xf32>
      %642 = arith.addf %638, %641 : vector<8x128xf32>
      %cst_62 = arith.constant -3.40282347E+38 : f32
      %643 = vector.broadcast %cst_62 : f32 to vector<8x128xf32>
      %644 = arith.select %149, %642, %643 : vector<8x128xi1>, vector<8x128xf32>
      %645 = arith.maximumf %553, %566 : vector<8x128xf32>
      %646 = arith.maximumf %645, %579 : vector<8x128xf32>
      %647 = arith.maximumf %646, %592 : vector<8x128xf32>
      %648 = arith.maximumf %647, %605 : vector<8x128xf32>
      %649 = arith.maximumf %648, %618 : vector<8x128xf32>
      %650 = arith.maximumf %649, %631 : vector<8x128xf32>
      %651 = arith.maximumf %650, %644 : vector<8x128xf32>
      %652 = arith.subf %553, %651 : vector<8x128xf32>
      %653 = math.exp %652 : vector<8x128xf32>
      %654 = arith.subf %566, %651 : vector<8x128xf32>
      %655 = math.exp %654 : vector<8x128xf32>
      %656 = arith.subf %579, %651 : vector<8x128xf32>
      %657 = math.exp %656 : vector<8x128xf32>
      %658 = arith.subf %592, %651 : vector<8x128xf32>
      %659 = math.exp %658 : vector<8x128xf32>
      %660 = arith.subf %605, %651 : vector<8x128xf32>
      %661 = math.exp %660 : vector<8x128xf32>
      %662 = arith.subf %618, %651 : vector<8x128xf32>
      %663 = math.exp %662 : vector<8x128xf32>
      %664 = arith.subf %631, %651 : vector<8x128xf32>
      %665 = math.exp %664 : vector<8x128xf32>
      %666 = arith.subf %644, %651 : vector<8x128xf32>
      %667 = math.exp %666 : vector<8x128xf32>
      %668 = arith.addf %653, %655 : vector<8x128xf32>
      %669 = arith.addf %668, %657 : vector<8x128xf32>
      %670 = arith.addf %669, %659 : vector<8x128xf32>
      %671 = arith.addf %670, %661 : vector<8x128xf32>
      %672 = arith.addf %671, %663 : vector<8x128xf32>
      %673 = arith.addf %672, %665 : vector<8x128xf32>
      %674 = arith.addf %673, %667 : vector<8x128xf32>
      %675 = tpu.reciprocal %674 {approx = true} : vector<8x128xf32> -> vector<8x128xf32>
      %676 = arith.mulf %674, %675 : vector<8x128xf32>
      %cst_63 = arith.constant 2.000000e+00 : f32
      %677 = vector.broadcast %cst_63 : f32 to vector<8x128xf32>
      %678 = arith.subf %677, %676 : vector<8x128xf32>
      %679 = arith.mulf %675, %678 : vector<8x128xf32>
      %680 = vector.extract_strided_slice %524 {offsets = [0, 0], sizes = [1, 128], strides = [1, 1]} : vector<8x128xf32> to vector<1x128xf32>
      %681 = vector.broadcast %680 : vector<1x128xf32> to vector<8x128xf32>
      %682 = arith.mulf %653, %681 : vector<8x128xf32>
      %683 = vector.extract_strided_slice %532 {offsets = [0, 0], sizes = [1, 128], strides = [1, 1]} : vector<8x128xf32> to vector<1x128xf32>
      %684 = vector.broadcast %683 : vector<1x128xf32> to vector<8x128xf32>
      %685 = arith.mulf %653, %684 : vector<8x128xf32>
      %686 = vector.extract_strided_slice %540 {offsets = [0, 0], sizes = [1, 128], strides = [1, 1]} : vector<8x128xf32> to vector<1x128xf32>
      %687 = vector.broadcast %686 : vector<1x128xf32> to vector<8x128xf32>
      %688 = arith.mulf %653, %687 : vector<8x128xf32>
      %689 = vector.extract_strided_slice %524 {offsets = [1, 0], sizes = [1, 128], strides = [1, 1]} : vector<8x128xf32> to vector<1x128xf32>
      %690 = vector.broadcast %689 : vector<1x128xf32> to vector<8x128xf32>
      %691 = arith.mulf %655, %690 : vector<8x128xf32>
      %692 = arith.addf %682, %691 : vector<8x128xf32>
      %693 = vector.extract_strided_slice %532 {offsets = [1, 0], sizes = [1, 128], strides = [1, 1]} : vector<8x128xf32> to vector<1x128xf32>
      %694 = vector.broadcast %693 : vector<1x128xf32> to vector<8x128xf32>
      %695 = arith.mulf %655, %694 : vector<8x128xf32>
      %696 = arith.addf %685, %695 : vector<8x128xf32>
      %697 = vector.extract_strided_slice %540 {offsets = [1, 0], sizes = [1, 128], strides = [1, 1]} : vector<8x128xf32> to vector<1x128xf32>
      %698 = vector.broadcast %697 : vector<1x128xf32> to vector<8x128xf32>
      %699 = arith.mulf %655, %698 : vector<8x128xf32>
      %700 = arith.addf %688, %699 : vector<8x128xf32>
      %701 = vector.extract_strided_slice %524 {offsets = [2, 0], sizes = [1, 128], strides = [1, 1]} : vector<8x128xf32> to vector<1x128xf32>
      %702 = vector.broadcast %701 : vector<1x128xf32> to vector<8x128xf32>
      %703 = arith.mulf %657, %702 : vector<8x128xf32>
      %704 = arith.addf %692, %703 : vector<8x128xf32>
      %705 = vector.extract_strided_slice %532 {offsets = [2, 0], sizes = [1, 128], strides = [1, 1]} : vector<8x128xf32> to vector<1x128xf32>
      %706 = vector.broadcast %705 : vector<1x128xf32> to vector<8x128xf32>
      %707 = arith.mulf %657, %706 : vector<8x128xf32>
      %708 = arith.addf %696, %707 : vector<8x128xf32>
      %709 = vector.extract_strided_slice %540 {offsets = [2, 0], sizes = [1, 128], strides = [1, 1]} : vector<8x128xf32> to vector<1x128xf32>
      %710 = vector.broadcast %709 : vector<1x128xf32> to vector<8x128xf32>
      %711 = arith.mulf %657, %710 : vector<8x128xf32>
      %712 = arith.addf %700, %711 : vector<8x128xf32>
      %713 = vector.extract_strided_slice %524 {offsets = [3, 0], sizes = [1, 128], strides = [1, 1]} : vector<8x128xf32> to vector<1x128xf32>
      %714 = vector.broadcast %713 : vector<1x128xf32> to vector<8x128xf32>
      %715 = arith.mulf %659, %714 : vector<8x128xf32>
      %716 = arith.addf %704, %715 : vector<8x128xf32>
      %717 = vector.extract_strided_slice %532 {offsets = [3, 0], sizes = [1, 128], strides = [1, 1]} : vector<8x128xf32> to vector<1x128xf32>
      %718 = vector.broadcast %717 : vector<1x128xf32> to vector<8x128xf32>
      %719 = arith.mulf %659, %718 : vector<8x128xf32>
      %720 = arith.addf %708, %719 : vector<8x128xf32>
      %721 = vector.extract_strided_slice %540 {offsets = [3, 0], sizes = [1, 128], strides = [1, 1]} : vector<8x128xf32> to vector<1x128xf32>
      %722 = vector.broadcast %721 : vector<1x128xf32> to vector<8x128xf32>
      %723 = arith.mulf %659, %722 : vector<8x128xf32>
      %724 = arith.addf %712, %723 : vector<8x128xf32>
      %725 = vector.extract_strided_slice %524 {offsets = [4, 0], sizes = [1, 128], strides = [1, 1]} : vector<8x128xf32> to vector<1x128xf32>
      %726 = vector.broadcast %725 : vector<1x128xf32> to vector<8x128xf32>
      %727 = arith.mulf %661, %726 : vector<8x128xf32>
      %728 = arith.addf %716, %727 : vector<8x128xf32>
      %729 = vector.extract_strided_slice %532 {offsets = [4, 0], sizes = [1, 128], strides = [1, 1]} : vector<8x128xf32> to vector<1x128xf32>
      %730 = vector.broadcast %729 : vector<1x128xf32> to vector<8x128xf32>
      %731 = arith.mulf %661, %730 : vector<8x128xf32>
      %732 = arith.addf %720, %731 : vector<8x128xf32>
      %733 = vector.extract_strided_slice %540 {offsets = [4, 0], sizes = [1, 128], strides = [1, 1]} : vector<8x128xf32> to vector<1x128xf32>
      %734 = vector.broadcast %733 : vector<1x128xf32> to vector<8x128xf32>
      %735 = arith.mulf %661, %734 : vector<8x128xf32>
      %736 = arith.addf %724, %735 : vector<8x128xf32>
      %737 = vector.extract_strided_slice %524 {offsets = [5, 0], sizes = [1, 128], strides = [1, 1]} : vector<8x128xf32> to vector<1x128xf32>
      %738 = vector.broadcast %737 : vector<1x128xf32> to vector<8x128xf32>
      %739 = arith.mulf %663, %738 : vector<8x128xf32>
      %740 = arith.addf %728, %739 : vector<8x128xf32>
      %741 = vector.extract_strided_slice %532 {offsets = [5, 0], sizes = [1, 128], strides = [1, 1]} : vector<8x128xf32> to vector<1x128xf32>
      %742 = vector.broadcast %741 : vector<1x128xf32> to vector<8x128xf32>
      %743 = arith.mulf %663, %742 : vector<8x128xf32>
      %744 = arith.addf %732, %743 : vector<8x128xf32>
      %745 = vector.extract_strided_slice %540 {offsets = [5, 0], sizes = [1, 128], strides = [1, 1]} : vector<8x128xf32> to vector<1x128xf32>
      %746 = vector.broadcast %745 : vector<1x128xf32> to vector<8x128xf32>
      %747 = arith.mulf %663, %746 : vector<8x128xf32>
      %748 = arith.addf %736, %747 : vector<8x128xf32>
      %749 = vector.extract_strided_slice %524 {offsets = [6, 0], sizes = [1, 128], strides = [1, 1]} : vector<8x128xf32> to vector<1x128xf32>
      %750 = vector.broadcast %749 : vector<1x128xf32> to vector<8x128xf32>
      %751 = arith.mulf %665, %750 : vector<8x128xf32>
      %752 = arith.addf %740, %751 : vector<8x128xf32>
      %753 = vector.extract_strided_slice %532 {offsets = [6, 0], sizes = [1, 128], strides = [1, 1]} : vector<8x128xf32> to vector<1x128xf32>
      %754 = vector.broadcast %753 : vector<1x128xf32> to vector<8x128xf32>
      %755 = arith.mulf %665, %754 : vector<8x128xf32>
      %756 = arith.addf %744, %755 : vector<8x128xf32>
      %757 = vector.extract_strided_slice %540 {offsets = [6, 0], sizes = [1, 128], strides = [1, 1]} : vector<8x128xf32> to vector<1x128xf32>
      %758 = vector.broadcast %757 : vector<1x128xf32> to vector<8x128xf32>
      %759 = arith.mulf %665, %758 : vector<8x128xf32>
      %760 = arith.addf %748, %759 : vector<8x128xf32>
      %761 = vector.extract_strided_slice %524 {offsets = [7, 0], sizes = [1, 128], strides = [1, 1]} : vector<8x128xf32> to vector<1x128xf32>
      %762 = vector.broadcast %761 : vector<1x128xf32> to vector<8x128xf32>
      %763 = arith.mulf %667, %762 : vector<8x128xf32>
      %764 = arith.addf %752, %763 : vector<8x128xf32>
      %765 = vector.extract_strided_slice %532 {offsets = [7, 0], sizes = [1, 128], strides = [1, 1]} : vector<8x128xf32> to vector<1x128xf32>
      %766 = vector.broadcast %765 : vector<1x128xf32> to vector<8x128xf32>
      %767 = arith.mulf %667, %766 : vector<8x128xf32>
      %768 = arith.addf %756, %767 : vector<8x128xf32>
      %769 = vector.extract_strided_slice %540 {offsets = [7, 0], sizes = [1, 128], strides = [1, 1]} : vector<8x128xf32> to vector<1x128xf32>
      %770 = vector.broadcast %769 : vector<1x128xf32> to vector<8x128xf32>
      %771 = arith.mulf %667, %770 : vector<8x128xf32>
      %772 = arith.addf %760, %771 : vector<8x128xf32>
      %773 = arith.mulf %764, %679 : vector<8x128xf32>
      %774 = arith.addf %460, %773 : vector<8x128xf32>
      %775 = arith.mulf %768, %679 : vector<8x128xf32>
      %776 = arith.addf %461, %775 : vector<8x128xf32>
      %777 = arith.mulf %772, %679 : vector<8x128xf32>
      %778 = arith.addf %462, %777 : vector<8x128xf32>
      %c0_64 = arith.constant 0 : index
      %779 = arith.index_cast %arg7 : i32 to index
      %c0_65 = arith.constant 0 : index
      %c0_66 = arith.constant 0 : index
      %780 = vector.load %arg6[%c0_64, %779, %c0_65, %c0_66] : memref<3x2x8x128xf32, #tpu.memory_space<vmem>>, vector<1x1x8x128xf32>
      %781 = vector.shape_cast %780 : vector<1x1x8x128xf32> to vector<8x128xf32>
      %782 = vector.shape_cast %774 : vector<8x128xf32> to vector<1x1x8x128xf32>
      tpu.vector_store %arg6[%c0_64, %779, %c0_65, %c0_66], %782 {strides = array<i32>} : memref<3x2x8x128xf32, #tpu.memory_space<vmem>>, vector<1x1x8x128xf32>,
      %c1_67 = arith.constant 1 : index
      %783 = arith.index_cast %arg7 : i32 to index
      %c0_68 = arith.constant 0 : index
      %c0_69 = arith.constant 0 : index
      %784 = vector.load %arg6[%c1_67, %783, %c0_68, %c0_69] : memref<3x2x8x128xf32, #tpu.memory_space<vmem>>, vector<1x1x8x128xf32>
      %785 = vector.shape_cast %784 : vector<1x1x8x128xf32> to vector<8x128xf32>
      %786 = vector.shape_cast %776 : vector<8x128xf32> to vector<1x1x8x128xf32>
      tpu.vector_store %arg6[%c1_67, %783, %c0_68, %c0_69], %786 {strides = array<i32>} : memref<3x2x8x128xf32, #tpu.memory_space<vmem>>, vector<1x1x8x128xf32>,
      %c2_70 = arith.constant 2 : index
      %787 = arith.index_cast %arg7 : i32 to index
      %c0_71 = arith.constant 0 : index
      %c0_72 = arith.constant 0 : index
      %788 = vector.load %arg6[%c2_70, %787, %c0_71, %c0_72] : memref<3x2x8x128xf32, #tpu.memory_space<vmem>>, vector<1x1x8x128xf32>
      %789 = vector.shape_cast %788 : vector<1x1x8x128xf32> to vector<8x128xf32>
      %790 = vector.shape_cast %778 : vector<8x128xf32> to vector<1x1x8x128xf32>
      tpu.vector_store %arg6[%c2_70, %787, %c0_71, %c0_72], %790 {strides = array<i32>} : memref<3x2x8x128xf32, #tpu.memory_space<vmem>>, vector<1x1x8x128xf32>,
    }
    %c2_i32_3 = arith.constant 2 : i32
    return
  }
  func.func @transform_0(%arg0: i32) -> i32 {
    %c0_i32 = arith.constant 0 : i32
    %c0_i32_0 = arith.constant 0 : i32
    return %c0_i32 : i32
  }
  func.func @transform_1(%arg0: i32) -> (i32, i32, i32, i32) {
    %c0_i32 = arith.constant 0 : i32
    %c0_i32_0 = arith.constant 0 : i32
    %c0_i32_1 = arith.constant 0 : i32
    %c0_i32_2 = arith.constant 0 : i32
    return %c0_i32, %arg0, %c0_i32_0, %c0_i32_1 : i32, i32, i32, i32
  }
  func.func @transform_2(%arg0: i32) -> (i32, i32, i32, i32) {
    %c0_i32 = arith.constant 0 : i32
    %c0_i32_0 = arith.constant 0 : i32
    %c0_i32_1 = arith.constant 0 : i32
    %c0_i32_2 = arith.constant 0 : i32
    return %c0_i32, %arg0, %c0_i32_0, %c0_i32_1 : i32, i32, i32, i32
  }
  func.func @transform_3(%arg0: i32) -> (i32, i32, i32, i32) {
    %c0_i32 = arith.constant 0 : i32
    %c0_i32_0 = arith.constant 0 : i32
    %c0_i32_1 = arith.constant 0 : i32
    %c0_i32_2 = arith.constant 0 : i32
    return %c0_i32, %arg0, %c0_i32_0, %c0_i32_1 : i32, i32, i32, i32
  }
  func.func @transform_4(%arg0: i32) -> (i32, i32, i32) {
    %c0_i32 = arith.constant 0 : i32
    %c0_i32_0 = arith.constant 0 : i32
    %c0_i32_1 = arith.constant 0 : i32
    return %arg0, %c0_i32, %c0_i32_0 : i32, i32, i32
  }
  func.func @transform_5(%arg0: i32) -> (i32, i32, i32, i32) {
    %c0_i32 = arith.constant 0 : i32
    %c0_i32_0 = arith.constant 0 : i32
    %c0_i32_1 = arith.constant 0 : i32
    %c0_i32_2 = arith.constant 0 : i32
    return %c0_i32, %arg0, %c0_i32_0, %c0_i32_1 : i32, i32, i32, i32
  }
}

</mosaic_0001>

<bundles_post_ra>
// kernel: _forward_impl.1
= control target key start
LH: loop header
LB: loop body
LE: loop exit
PB: predicated region body
PF: predicated region fallthrough
CT: control target
= control target key end

     0   :  { %s3097_s0 = inlined_call_operand.vmem [shape: f32[54], index: 0, kind: input, shape index: {}]   ;;  %s3098_s1 = inlined_call_operand.vmem [shape: f32[3,4,8,128], index: 1, kind: input, shape index: {}]   ;;  %s3099_s2 = inlined_call_operand.hbm [shape: f32[3,4,8,128], index: 2, kind: input, shape index: {}]   ;;  %s3100_s3 = inlined_call_operand.hbm [shape: f32[3,4,8,128], index: 3, kind: input, shape index: {}]   ;;  %s3101_s4 = inlined_call_operand.vmem [shape: f32[4,8,128], index: 4, kind: input, shape index: {}]   ;;  %s3102_s5 = inlined_call_operand.hbm [shape: f32[3,4,8,128], index: 5, kind: output, shape index: {}]  }
   0x1   :  { %3120 = sst [smem:[#allocation81_spill]] %s3097_s0 }
   0x2   :  { %3121 = sst [smem:[#allocation82_spill]] %s3098_s1 }
   0x3   :  { %3122 = sst [smem:[#allocation83_spill]] %s3099_s2 }
   0x4   :  { %3123 = sst [smem:[#allocation84_spill]] %s3100_s3 }
   0x5   :  { %3124 = sst [smem:[#allocation85_spill]] %s3101_s4 }
   0x6   :  { %3125 = sst [smem:[#allocation86_spill]] %s3102_s5 }
   0x7   :  { %10 = vsyncpa [#allocation5], 0 }
   0x8   :  { %11 = vsyncpa [#allocation3], 0 }
   0x9   :  { %13 = vsyncpa [#allocation3 + $0x1], 0 }
   0xa   :  { %14 = vsyncpa [#allocation9], 0 }
   0xb   :  { %16 = vsyncpa [#allocation9 + $0x1], 0 }
   0xc   :  { %17 = vsyncpa [#allocation4], 0 }
   0xd   :  { %19 = vsyncpa [#allocation4 + $0x1], 0  ;;  %s1989_s18 = smov 0   ;;  %s1991_s19 = smov 0  }
   0xe   :  { %s1993_s20 = smov 0   ;;  %s1995_s21 = smov 0  }
   0xf LB: > { %3126 = sst [smem:[#allocation23_spill]] %s1921_s18  ;;  %s2010_s22 = sadd.s32 4294967295, %s1933_s21   ;;  %s1933_s21 = sphi %s1995_s21, %s3277_s21   ;;  %s1929_s20 = sphi %s1993_s20, %s3280_s20   ;;  %s1925_s19 = sphi %s1991_s19, %s3279_s19   ;;  %s1921_s18 = sphi %s1989_s18, %s3278_s18  }
  0x10   : > { %3127 = sst [smem:[#allocation24_spill]] %s1925_s19  ;;  %s1631_s23 = sadd.s32 4294967294, %s1933_s21  }
  0x11   : > { %3128 = sst [smem:[#allocation25_spill]] %s1929_s20  ;;  %s2014_s24 = sadd.s32 1, %s1933_s21  }
  0x12   : > { %3129 = sst [smem:[#allocation26_spill]] %s1933_s21  ;;  %s53_s25 = sadd.s32 1, %s1929_s20 }
  0x13   : > { %3130 = sst [smem:[#allocation27_spill]] %s2010_s22  ;;  %s50_s26 = ssub.s32 %s1933_s21, %s2014_s24 }
  0x14   : > { %3131 = sst [smem:[#allocation28_spill]] %s2014_s24  ;;  %p60_p0 = scmp.ne.s32.totalorder %s1929_s20, %s1925_s19 }
  0x15   : > { %p51_p1 = scmp.eq.s32.totalorder %s50_s26, 0  ;;  %p61_p2 = scmp.eq.s32.totalorder %s1933_s21, 0 }
  0x16   : > { %p92_p3 = scmp.ne.s32.totalorder %s1925_s19, %s1921_s18  ;;  %p93_p4 = scmp.eq.s32.totalorder %s2010_s22, 0 }
  0x17   : > { %s2026_s27 = scalar_select %p51_p1, %s1929_s20, %s53_s25  }
  0x18   : > { %p2028_p5 = por %p61_p2, %p60_p0  ;;  %p2034_p6 = por %p93_p4, %p92_p3 }
  0x19   : > { %3132 = sst [smem:[#allocation29_spill]] %s2026_s27  ;;  %p168_p7 = scmp.eq.s32.totalorder %s2010_s22, 1 }
  0x1a   : > { %s3134_s29 = scalar_select %p2034_p6, 1, 0 }
  0x1b   : > { %p174_p8 = scmp.eq.s32.totalorder %s1631_s23, 1  ;;  %p1632_p9 = scmp.ge.s32.totalorder %s1933_s21, 1 }
  0x1c   : > { %p181_p10 = scmp.lt.s32.totalorder %s1933_s21, 3  ;;  %p2041_p11 = por %p168_p7, %p60_p0 }
  0x1d   : > { %p2045_p12 = por %p174_p8, %p92_p3  ;;  %s3140_s0 = sld [smem:[#allocation81_spill]] }
  0x1e   : > { %s3135_s30 = scalar_select %p2041_p11, 1, 0 }
  0x1f   : > { %s3137_s6 = scalar_select %p2045_p12, 1, 0 }
  0x20   : > { %3136 = sst [smem:[#allocation30_spill]] %s3135_s30  ;;  %p2049_p13 = pnand %p1632_p9, %p181_p10 }
  0x21   : > { %3138 = sst [smem:[#allocation31_spill]] %s3137_s6 }
  0x22   : > { %p1761_p1 = pneg %p2049_p13 }
  0x23   : > { %s194_s10 = sshll.u32 %s3140_s0, 4  ;;  %s195_s10 = int_to_ptr.vmem [resolvable:$true] %s194_s10 }
  0x24   : > { %p1762_p0 = pnand %p1761_p1, %p93_p4  ;;  %s1868_s11 = scalar_lea.vmem %s195_s10, 16 }
  0x25   : > { %p1869_p2 = scmp.ne.s32.totalorder %s195_s10, %s1868_s11  ;;  %p1876_p12 = scmp.lt.s32.totalorder %s195_s10, %s195_s10 }
  0x26   : > { %p1870_p3 = pneg %p1762_p0  ;;  %p1877_p9 = scmp.lt.s32.totalorder %s1868_s11, %s1868_s11 }
  0x28   : > { %p1871_p7 = pnand %p1870_p3, %p1869_p2  ;;  %p1878_p10 = por %p1877_p9, %p1876_p12 }
  0x2a   : > { %p1872_p8 = pneg %p1871_p7 }
  0x2c   : > { %p1879_p11 = pnand %p1878_p10, %p1872_p8 }
  0x2e   : > { %1882 = shalt.err (!%p1879_p11)
}
  0x2f   : > { %s1939_s12 = smov [#allocation2]   ;;  %p1634_p6 = scmp.ge.s32.totalorder %s1933_s21, 2 }
  0x30   : > { %1764 = dma.vmem_to_smem (!%p1762_p0), %s195_s10, 16, %s1939_s12, [#allocation5]  }
  0x31   : > { %201 = sbr.rel (%p1634_p6) target bundleno = 93 (0x5d), region = 20 }
  0x36   : > { %204 = sbr.rel (!%p2028_p5) target bundleno = 67 (0x43), region = 24  ;;  %s206_s13 = sand.u32 (%p2028_p5), 1, %s1929_s20  }
  0x37   : > { %s1723_s14 = sshll.u32 (%p2028_p5), %s1933_s21, 4  ;;  %s1727_s15 = smul.u32 (%p2028_p5), 48, %s206_s13 }
  0x38   : > { %s3141_s1 = sld [smem:[#allocation82_spill]] (%p2028_p5) }
  0x39   : > { %s208_s25 = scalar_lea.vmem (%p2028_p5), [#allocation6], %s1727_s15 }
  0x3e   : > { %s211_s23 = scalar_lea.vmem %s3141_s1, %s1723_s14 }
  0x3f   : > { %v250_v0 = vld [vmem:[%s211_s23] sm:$0xff]  ;;  %v252_v1 = vld [vmem:[%s211_s23 + $0x8] sm:$0xff] }
  0x40   : > { %v254_v2 = vld [vmem:[%s211_s23 + $0x20] sm:$0xff]  ;;  %v256_v3 = vld [vmem:[%s211_s23 + $0x28] sm:$0xff]  ;;  %251 = vst [vmem:[%s208_s25] sm:$0xff] %v250_v0  ;;  %253 = vst [vmem:[%s208_s25 + $0x8] sm:$0xff] %v252_v1 }
  0x41   : > { %v258_v4 = vld [vmem:[%s211_s23 + $0x40] sm:$0xff]  ;;  %v260_v5 = vld [vmem:[%s211_s23 + $0x48] sm:$0xff]  ;;  %255 = vst [vmem:[%s208_s25 + $0x10] sm:$0xff] %v254_v2  ;;  %257 = vst [vmem:[%s208_s25 + $0x18] sm:$0xff] %v256_v3 }
  0x42   : > { %259 = vst [vmem:[%s208_s25 + $0x20] sm:$0xff] %v258_v4  ;;  %261 = vst [vmem:[%s208_s25 + $0x28] sm:$0xff] %v260_v5 }
  0x43 PF: > { %s2071_s26 = sand.u32 1, %s1929_s20   ;;  %s1724_s9 = sshll.u32 %s1933_s21, 8 }
  0x44   : > { %s1728_s8 = smul.u32 48, %s2071_s26  ;;  %s1940_s10 = smov 512  }
  0x45   : > { %1734 = sst [smem:[#allocation12]] (%p2028_p5), %s1940_s10  ;;  %s1941_s23 = smov 256  }
  0x46   : > { %s1733_s11 = scalar_select %p2028_p5, [#allocation0], [#allocation17] }
  0x47   : > { %s3142_s2 = sld [smem:[#allocation83_spill]]  ;;  %s272_s16 = scalar_lea.vmem [#allocation7], %s1728_s8 }
  0x48   : > { %s283_s15 = sld [smem:[%s1733_s11]]   ;;  %s291_s17 = sshll.u32 %s272_s16, 4  ;;  %s292_s17 = int_to_ptr.vmem [resolvable:$true] %s291_s17 }
  0x49   : > { %1735 = sst [smem:[#allocation12 + $0x1]] (%p2028_p5), %s1941_s23  ;;  %s1942_s25 = smov 2  }
  0x4a   : > { %1736 = sst [smem:[#allocation12 + $0x2]] (%p2028_p5), %s1942_s25  ;;  %s1943_s0 = smov 128  }
  0x4b   : > { %1737 = sst [smem:[#allocation12 + $0x3]] (%p2028_p5), %s1943_s0  ;;  %s1944_s10 = smov 8  }
  0x4c   : > { %1738 = sst [smem:[#allocation12 + $0x4]] (%p2028_p5), %s1943_s0  ;;  %s269_s13 = scalar_lea.sflag [#allocation3], %s2071_s26 }
  0x4d   : > { %s278_s14 = scalar_lea.hbm %s3142_s2, %s1724_s9  ;;  %1739 = sst [smem:[#allocation12 + $0x5]] (%p2028_p5), %s1944_s10 }
  0x4e   : > { %s1639_s12 = sshll.u32 %s283_s15, 26  ;;  %s1945_s1 = smov 131072  }
  0x4f   : > { %s1640_s11 = sadd.s32 134217728, %s1639_s12 }
  0x50   : > { %1740 = dma.general (%p2028_p5), %s278_s14, 768, %s292_s17, %s269_s13, %s1945_s1, [#allocation12], %s1640_s11, 0  }
  0x51   : > { %s3143_s3 = sld [smem:[#allocation84_spill]]  ;;  %s318_s10 = scalar_lea.vmem [#allocation8], %s1728_s8 }
  0x52   : > { %s1741_s0 = scalar_select %p2028_p5, [#allocation0], [#allocation18] }
  0x53   : > { %s337_s15 = sshll.u32 %s318_s10, 4  ;;  %s1946_s2 = smov 512   ;;  %s338_s15 = int_to_ptr.vmem [resolvable:$true] %s337_s15 }
  0x54   : > { %s329_s12 = sld [smem:[%s1741_s0]]   ;;  %s1947_s1 = smov 256  }
  0x55   : > { %1742 = sst [smem:[#allocation14]] (%p2028_p5), %s1946_s2  ;;  %s1948_s14 = smov 2  }
  0x56   : > { %1743 = sst [smem:[#allocation14 + $0x1]] (%p2028_p5), %s1947_s1  ;;  %s1949_s17 = smov 128  }
  0x57   : > { %s324_s25 = scalar_lea.hbm %s3143_s3, %s1724_s9  ;;  %1744 = sst [smem:[#allocation14 + $0x2]] (%p2028_p5), %s1948_s14 }
  0x58   : > { %1745 = sst [smem:[#allocation14 + $0x3]] (%p2028_p5), %s1949_s17  ;;  %s1950_s9 = smov 8  }
  0x59   : > { %1746 = sst [smem:[#allocation14 + $0x4]] (%p2028_p5), %s1949_s17  ;;  %s315_s13 = scalar_lea.sflag [#allocation9], %s2071_s26 }
  0x5a   : > { %s1643_s8 = sshll.u32 %s329_s12, 26  ;;  %1747 = sst [smem:[#allocation14 + $0x5]] (%p2028_p5), %s1950_s9 }
  0x5b   : > { %s1644_s11 = sadd.s32 134217728, %s1643_s8  ;;  %s1951_s16 = smov 131072  }
  0x5c   : > { %1748 = dma.general (%p2028_p5), %s324_s25, 768, %s338_s15, %s315_s13, %s1951_s16, [#allocation14], %s1644_s11, 0  }
  0x5d PF: > { %371 = sbr.rel (%p2049_p13) target bundleno = 386 (0x182), region = 74 }
  0x62   : > { %1904 = dma.done.wait (%p93_p4), [#allocation5], 16  }
  0x63   : > { %1906 = vsyncadd (%p93_p4), [#allocation5], 4294967280  ;;  %s2122_s2 = sand.u32 1, %s1925_s19   ;;  %p3145_p5 = scmp.ne.s32.totalorder %s3134_s29, 0 }
  0x64   : > { %3144 = sst [smem:[#allocation32_spill]] %s2122_s2  ;;  %s2125_s26 = smul.u32 48, %s2122_s2 }
  0x65   : > { %s385_s23 = scalar_lea.sflag [#allocation3], %s2122_s2 }
  0x66   : > { %1908 = dma.done.wait (%p3145_p5), %s385_s23, 768  }
  0x67   : > { %1910 = vsyncadd (%p3145_p5), %s385_s23, 4294966528  ;;  %s394_s25 = scalar_lea.sflag [#allocation9], %s2122_s2 }
  0x68   : > { %1912 = dma.done.wait (%p3145_p5), %s394_s25, 768  }
  0x69   : > { %1914 = vsyncadd (%p3145_p5), %s394_s25, 4294966528 }
  0x6a   : > { %402 = sfence }
  0x6b   : > { %s1647_s10 = sshll.u32 %s2010_s22, 1  ;;  %v503_v6 = vlaneseq  ;;  %s2141_s15 = sld [smem:[#allocation2]] }
  0x6c   : > { %p443_p4 = scmp.lt.s32.totalorder %s1647_s10, 3  ;;  %s2143_s12 = sld [smem:[#allocation2 + $0x1]] }
  0x6d   : > { %v2145_v7 = vshrl.u32 %v503_v6, 7  ;;  %s2147_s1 = sld [smem:[#allocation2 + $0x2]] }
  0x6e   : > { %s3282_s10 = smov (!%p443_p4, %s1647_s10), 3  ;;  %s2153_s14 = sld [smem:[#allocation2 + $0x3]] }
  0x6f   : > { %3148 = vst [vmem:[#allocation35_spill] sm:$0xff] %v2145_v7  ;;  %vm506_vm1 = vcmp.ne.s32.totalorder %v2145_v7, 1  ;;  %vm507_vm2 = vcmp.ne.s32.totalorder %v2145_v7, 2  ;;  %vm508_vm3 = vcmp.ne.s32.totalorder %v2145_v7, 3  ;;  %s1648_s29 = sshll.u32 %s3282_s10, 3  ;;  %vm509_vm4 = vcmp.ne.s32.totalorder %v2145_v7, 4 }
  0x70   : > { %vm510_vm5 = vcmp.ne.s32.totalorder %v2145_v7, 5  ;;  %vm511_vm6 = vcmp.ne.s32.totalorder %v2145_v7, 6  ;;  %s3151_s4 = sld [smem:[#allocation85_spill]]  ;;  %vm512_vm7 = vcmp.ne.s32.totalorder %v2145_v7, 7 }
  0x71   : > { %3146 = sst [smem:[#allocation33_spill]] %s2141_s15 }
  0x72   : > { %3147 = sst [smem:[#allocation34_spill]] %s2143_s12 }
  0x73   : > { %3149 = sst [smem:[#allocation36_spill]] %s2147_s1 }
  0x74   : > { %3150 = sst [smem:[#allocation37_spill]] %s2153_s14 }
  0x75   : > { %s2163_s11 = sld [smem:[#allocation2 + $0x4]] }
  0x76   : > { %s2161_s9 = scalar_lea.vmem %s3151_s4, %s1648_s29  ;;  %s2166_s13 = sld [smem:[#allocation2 + $0x5]] }
  0x77   : > { %3152 = sst [smem:[#allocation38_spill]] %s2161_s9 }
  0x78   : > { %s2168_s16 = sld [smem:[#allocation2 + $0x6]] }
  0x79   : > { %s2170_s23 = sld [smem:[#allocation2 + $0x7]] }
  0x7a   : > { %s2172_s25 = sld [smem:[#allocation2 + $0x8]] }
  0x7b   : > { %3153 = sst [smem:[#allocation39_spill]] %s2163_s11 }
  0x7c   : > { %3154 = sst [smem:[#allocation40_spill]] %s2166_s13 }
  0x7d   : > { %s2174_s10 = sld [smem:[#allocation2 + $0x9]] }
  0x7e   : > { %3155 = sst [smem:[#allocation41_spill]] %s2168_s16 }
  0x7f   : > { %3156 = sst [smem:[#allocation42_spill]] %s2170_s23 }
  0x80   : > { %s2176_s0 = sld [smem:[#allocation2 + $0xa]] }
  0x81   : > { %s2178_s7 = sld [smem:[#allocation2 + $0xb]] }
  0x82   : > { %s2180_s29 = sld [smem:[#allocation2 + $0xc]] }
  0x83   : > { %3157 = sst [smem:[#allocation43_spill]] %s2174_s10 }
  0x84   : > { %s2182_s17 = sld [smem:[#allocation2 + $0xd]] }
  0x85   : > { %s2184_s8 = sld [smem:[#allocation2 + $0xe]] }
  0x86   : > { %3158 = sst [smem:[#allocation44_spill]] %s2176_s0 }
  0x87   : > { %3159 = sst [smem:[#allocation45_spill]] %s2178_s7 }
  0x88   : > { %3160 = sst [smem:[#allocation46_spill]] %s2180_s29 }
  0x89   : > { %s2186_s28 = sld [smem:[#allocation2 + $0xf]] }
  0x8a   : > { %3161 = sst [smem:[#allocation47_spill]] %s2182_s17 }
  0x8b   : > { %3162 = sst [smem:[#allocation48_spill]] %s2184_s8 }
  0x8c   : > { %s2188_s3 = sld [smem:[#allocation2 + $0x10]] }
  0x8d   : > { %s2190_s4 = sld [smem:[#allocation2 + $0x11]] }
  0x8e   : > { %s2192_s27 = sld [smem:[#allocation2 + $0x12]] }
  0x8f   : > { %3163 = sst [smem:[#allocation49_spill]] %s2186_s28 }
  0x90   : > { %s2194_s20 = sld [smem:[#allocation2 + $0x13]] }
  0x91   : > { %s2196_s19 = sld [smem:[#allocation2 + $0x14]] }
  0x92   : > { %3164 = sst [smem:[#allocation50_spill]] %s2188_s3 }
  0x93   : > { %3165 = sst [smem:[#allocation51_spill]] %s2190_s4 }
  0x94   : > { %s2198_s24 = sld [smem:[#allocation2 + $0x15]] }
  0x95   : > { %s2200_s21 = sld [smem:[#allocation2 + $0x16]] }
  0x96   : > { %3166 = sst [smem:[#allocation52_spill]] %s2194_s20 }
  0x97   : > { %3167 = sst [smem:[#allocation53_spill]] %s2196_s19 }
  0x98   : > { %s2202_s6 = sld [smem:[#allocation2 + $0x17]] }
  0x99   : > { %s2204_s18 = sld [smem:[#allocation2 + $0x18]] }
  0x9a   : > { %s2206_s5 = sld [smem:[#allocation2 + $0x19]] }
  0x9b   : > { %3168 = sst [smem:[#allocation54_spill]] %s2200_s21 }
  0x9c   : > { %s2208_s30 = sld [smem:[#allocation2 + $0x1a]] }
  0x9d   : > { %s2210_s22 = sld [smem:[#allocation2 + $0x1b]] }
  0x9e   : > { %3169 = sst [smem:[#allocation55_spill]] %s2202_s6 }
  0x9f   : > { %3170 = sst [smem:[#allocation56_spill]] %s2204_s18 }
  0xa0   : > { %3171 = sst [smem:[#allocation57_spill]] %s2206_s5 }
  0xa1   : > { %s2212_s2 = sld [smem:[#allocation2 + $0x1c]] }
  0xa2   : > { %s2214_s4 = sld [smem:[#allocation2 + $0x1d]] }
  0xa3   : > { %3172 = sst [smem:[#allocation58_spill]] %s2210_s22 }
  0xa4   : > { %s2216_s3 = sld [smem:[#allocation2 + $0x1e]] }
  0xa5   : > { %s2218_s8 = sld [smem:[#allocation2 + $0x1f]] }
  0xa6   : > { %s2220_s7 = sld [smem:[#allocation2 + $0x20]] }
  0xa7   : > { %3173 = sst [smem:[#allocation59_spill]] %s2212_s2 }
  0xa8   : > { %3174 = sst [smem:[#allocation60_spill]] %s2214_s4 }
  0xa9   : > { %s2222_s17 = sld [smem:[#allocation2 + $0x21]] }
  0xaa   : > { %3175 = sst [smem:[#allocation61_spill]] %s2216_s3 }
  0xab   : > { %3176 = sst [smem:[#allocation62_spill]] %s2218_s8 }
  0xac   : > { %3177 = sst [smem:[#allocation63_spill]] %s2220_s7 }
  0xad   : > { %s2224_s0 = sld [smem:[#allocation2 + $0x22]] }
  0xae   : > { %s2226_s28 = sld [smem:[#allocation2 + $0x23]] }
  0xaf   : > { %3178 = sst [smem:[#allocation64_spill]] %s2222_s17 }
  0xb0   : > { %s2228_s29 = sld [smem:[#allocation2 + $0x24]] }
  0xb1   : > { %s2230_s10 = sld [smem:[#allocation2 + $0x25]] }
  0xb2   : > { %s2232_s22 = sld [smem:[#allocation2 + $0x26]] }
  0xb3   : > { %3179 = sst [smem:[#allocation65_spill]] %s2224_s0 }
  0xb4   : > { %3180 = sst [smem:[#allocation66_spill]] %s2226_s28 }
  0xb5   : > { %s2234_s4 = sld [smem:[#allocation2 + $0x27]] }
  0xb6   : > { %3181 = sst [smem:[#allocation67_spill]] %s2228_s29 }
  0xb7   : > { %3182 = sst [smem:[#allocation68_spill]] %s2230_s10 }
  0xb8   : > { %3183 = sst [smem:[#allocation69_spill]] %s2232_s22 }
  0xb9   : > { %s2236_s2 = sld [smem:[#allocation2 + $0x28]] }
  0xba   : > { %s2238_s8 = sld [smem:[#allocation2 + $0x29]] }
  0xbb   : > { %3184 = sst [smem:[#allocation70_spill]] %s2234_s4 }
  0xbc   : > { %s2240_s7 = sld [smem:[#allocation2 + $0x2a]] }
  0xbd   : > { %s2242_s17 = sld [smem:[#allocation2 + $0x2b]] }
  0xbe   : > { %s2244_s0 = sld [smem:[#allocation2 + $0x2c]] }
  0xbf   : > { %3185 = sst [smem:[#allocation71_spill]] %s2236_s2 }
  0xc0   : > { %3186 = sst [smem:[#allocation72_spill]] %s2238_s8 }
  0xc1   : > { %s2246_s28 = sld [smem:[#allocation2 + $0x2d]] }
  0xc2   : > { %3187 = sst [smem:[#allocation73_spill]] %s2240_s7 }
  0xc3   : > { %3188 = sst [smem:[#allocation74_spill]] %s2242_s17 }
  0xc4   : > { %3189 = sst [smem:[#allocation75_spill]] %s2244_s0  ;;  %s2265_s0 = smov 0  }
  0xc5   : > { %s2248_s3 = sld [smem:[#allocation2 + $0x2e]] }
  0xc6   : > { %s2250_s10 = sld [smem:[#allocation2 + $0x2f]] }
  0xc7   : > { %s2252_s22 = sld [smem:[#allocation2 + $0x30]] }
  0xc8   : > { %s2254_s29 = sld [smem:[#allocation2 + $0x31]] }
  0xc9   : > { %s2256_s4 = sld [smem:[#allocation2 + $0x32]] }
  0xca   : > { %s2258_s2 = sld [smem:[#allocation2 + $0x33]] }
  0xcb   : > { %s2260_s8 = sld [smem:[#allocation2 + $0x34]] }
  0xcc   : > { %3190 = sst [smem:[#allocation76_spill]] %s2250_s10 }
  0xcd   : > { %s2262_s7 = sld [smem:[#allocation2 + $0x35]] }
  0xcf   : > { %3191 = sst [smem:[#allocation77_spill]] %s2256_s4 }
  0xd1   : > { %3192 = sst [smem:[#allocation78_spill]] %s2260_s8 }
  0xd3   : > { %3193 = sst [smem:[#allocation79_spill]] %s2262_s7 }
  0xd4 LB: >> { %v3194_v7 = vld [vmem:[#allocation35_spill] sm:$0xff]  ;;  %s3195_s15 = sld [smem:[#allocation33_spill]]  ;;  %s2271_s7 = sshll.u32 %s1937_s0, 3  ;;  %v606_v12 = vstv %s2192_s27  ;;  %v608_v13 = vstv %s2198_s24  ;;  %v637_v50 = vstv %s2172_s25  ;;  %v645_v51 = vstv %s2208_s30  ;;  %s1937_s0 = sphi %s2265_s0, %s518_s0  }
  0xd5   : >> { %s3196_s14 = sld [smem:[#allocation37_spill]]  ;;  %s3201_s17 = scalar_lea.vmem [#allocation6], %s2125_s26  ;;  %v2326_v52 = vsub.s32 0, %v3194_v7  ;;  %v2337_v61 = vsub.s32 1, %v3194_v7  ;;  %v2342_v63 = vsub.s32 2, %v3194_v7  ;;  %vm3212_vm0 = vcmp.ne.s32.totalorder %v3194_v7, 0 }
  0xd6   : >> { %s3197_s12 = sld [smem:[#allocation34_spill]]  ;;  %s520_s8 = scalar_lea.vmem %s3201_s17, %s2271_s7 [#allocation6] }
  0xd7   : >> { %s3198_s11 = sld [smem:[#allocation39_spill]]  ;;  %s3202_s4 = scalar_lea.vmem [#allocation7], %s2125_s26  ;;  %v2281_v10 = vld [vmem:[%s520_s8] sm:$0xff]  ;;  %v2283_v11 = vld [vmem:[%s520_s8 + $0x10] sm:$0xff] }
  0xd8   : >> { %s3199_s20 = sld [smem:[#allocation52_spill]]  ;;  %s528_s10 = scalar_lea.vmem %s3202_s4, %s2271_s7 [#allocation7]  ;;  %v2299_v24 = vld [vmem:[%s520_s8 + $0x20] sm:$0xff] }
  0xd9   : >> { %s3200_s21 = sld [smem:[#allocation54_spill]]  ;;  %v2287_v14 = vld [vmem:[%s528_s10] sm:$0xff]  ;;  %v2289_v15 = vld [vmem:[%s528_s10 + $0x10] sm:$0xff]  ;;  %v638_v54 = vmul.f32 %v2299_v24, %v637_v50  ;;  %s3227_s8 = scalar_lea.vmem [#allocation8], %s2125_s26 }
  0xda   : >> { %s3203_s16 = sld [smem:[#allocation41_spill]]  ;;  %v598_v8 = vstv %s3195_s15  ;;  %v2301_v25 = vld [vmem:[%s528_s10 + $0x20] sm:$0xff]  ;;  %v607_v26 = vmul.f32 %v606_v12, %v2287_v14  ;;  %v609_v27 = vmul.f32 %v2289_v15, %v608_v13  ;;  %v2363_v13 = vsub.s32 3, %v3194_v7  ;;  %s518_s0 = sadd.s32 1, %s1937_s0  }
  0xdb   : >> { %s3204_s18 = sld [smem:[#allocation56_spill]]  ;;  %v600_v9 = vstv %s3196_s14  ;;  %v599_v20 = vmul.f32 %v598_v8, %v2281_v10  ;;  %v646_v56 = vmul.f32 %v2301_v25, %v645_v51  ;;  %v2414_v51 = vsub.s32 5, %v3194_v7  ;;  %p515_p11 = scmp.ge.s32.totalorder %s518_s0, 2  }
  0xdc   : >> { %s3205_s23 = sld [smem:[#allocation42_spill]]  ;;  %v615_v16 = vstv %s3197_s12  ;;  %v601_v21 = vmul.f32 %v2283_v11, %v600_v9  ;;  %v610_v41 = vadd.f32 %v609_v27, %v607_v26 }
  0xdd   : >> { %v617_v17 = vstv %s3198_s11  ;;  %s3206_s1 = sld [smem:[#allocation36_spill]]  ;;  %v616_v28 = vmul.f32 %v615_v16, %v2281_v10 }
  0xde   : >> { %v623_v18 = vstv %s3199_s20  ;;  %s3207_s13 = sld [smem:[#allocation40_spill]]  ;;  %v618_v29 = vmul.f32 %v2283_v11, %v617_v17  ;;  %v602_v40 = vadd.f32 %v601_v21, %v599_v20 }
  0xdf   : >> { %v625_v19 = vstv %s3200_s21  ;;  %s3208_s19 = sld [smem:[#allocation53_spill]]  ;;  %v624_v31 = vmul.f32 %v623_v18, %v2287_v14 }
  0xe0   : >> { %s3209_s6 = sld [smem:[#allocation55_spill]]  ;;  %v603_v22 = vstv %s3203_s16  ;;  %v626_v32 = vmul.f32 %v2289_v15, %v625_v19  ;;  %v619_v42 = vadd.f32 %v618_v29, %v616_v28 }
  0xe1   : >> { %v611_v23 = vstv %s3204_s18  ;;  %s3210_s5 = sld [smem:[#allocation57_spill]]  ;;  %v604_v37 = vmul.f32 %v2299_v24, %v603_v22 }
  0xe2   : >> { %v620_v30 = vstv %s3205_s23  ;;  %v612_v38 = vmul.f32 %v2301_v25, %v611_v23  ;;  %s3211_s9 = sld [smem:[#allocation38_spill]]  ;;  %v627_v48 = vadd.f32 %v626_v32, %v624_v31 }
  0xe3   : >> { %v632_v33 = vstv %s3206_s1  ;;  %v621_v43 = vmul.f32 %v2299_v24, %v620_v30  ;;  %v605_v57 = vadd.f32 %v604_v37, %v602_v40  ;;  %v2385_v30 = vsub.s32 4, %v3194_v7  ;;  %s3223_s10 = sld [smem:[#allocation67_spill]] }
  0xe4   : >> { %v634_v34 = vstv %s3207_s13  ;;  %v633_v44 = vmul.f32 %v632_v33, %v2281_v10  ;;  %v2332_v58 = vadd.f32 %v612_v38, %v610_v41  ;;  %s3224_s17 = sld [smem:[#allocation70_spill]] }
  0xe5   : >> { %v640_v35 = vstv %s3208_s19  ;;  %v635_v45 = vmul.f32 %v2283_v11, %v634_v34  ;;  %v622_v59 = vadd.f32 %v621_v43, %v619_v42  ;;  %v2346_v2 = vmul.f32 0.57735026, %v605_v57  ;;  %s3228_s1 = sld [smem:[#allocation73_spill]] }
  0xe6   : >> { %v642_v36 = vstv %s3209_s6  ;;  %v641_v46 = vmul.f32 %v640_v35, %v2287_v14  ;;  %v676_v4 = vrot.slane %v2332_v58, %v2326_v52  ;;  %v694_v6 = vrot.slane %v2332_v58, %v2337_v61  ;;  %s3230_s6 = sld [smem:[#allocation68_spill]] }
  0xe7   : >> { %v628_v39 = vstv %s3210_s5  ;;  %v643_v47 = vmul.f32 %v2289_v15, %v642_v36  ;;  %v636_v53 = vadd.f32 %v635_v45, %v633_v44  ;;  %v2348_v3 = vmul.f32 0.57735026, %v622_v59  ;;  %s3229_s5 = sld [smem:[#allocation43_spill]] }
  0xe8   : >> { %v629_v49 = vmul.f32 %v2301_v25, %v628_v39  ;;  %s540_s4 = scalar_lea.vmem %s3211_s9, %s2271_s7  ;;  %v677_v18 = vmul.f32 %v676_v4, %v2346_v2  ;;  %v712_v20 = vrot.slane %v2332_v58, %v2342_v63  ;;  %v695_v22 = vmul.f32 %v694_v6, %v2346_v2  ;;  %s3231_s9 = sld [smem:[#allocation71_spill]] }
  0xe9   : >> { %v644_v55 = vadd.f32 %v643_v47, %v641_v46  ;;  %v2339_v62 = vld [vmem:[%s540_s4] sm:$0xff]  ;;  %v639_v0 = vadd.f32 %v638_v54, %v636_v53  ;;  %v730_v33 = vrot.slane %v2332_v58, %v2363_v13  ;;  %s2526_s4 = scalar_lea.vmem %s3227_s8, %s2271_s7 [#allocation8]  ;;  %s3234_s8 = sld [smem:[#allocation69_spill]] }
  0xea   : >> { %v2334_v60 = vadd.f32 %v629_v49, %v627_v48  ;;  %v545_v9 = vrot.slane %v2339_v62, %v2326_v52  ;;  %v552_v12 = vrot.slane %v2339_v62, %v2337_v61  ;;  %v559_v28 = vrot.slane %v2339_v62, %v2342_v63  ;;  %s3235_s11 = sld [smem:[#allocation46_spill]] }
  0xeb   : >> { %v2344_v1 = vadd.f32 %v646_v56, %v644_v55  ;;  %v2365_v16 = vmul.f32 0.57735026, %v639_v0  ;;  %v566_v29 = vrot.slane %v2339_v62, %v2363_v13  ;;  %v713_v36 = vmul.f32 %v712_v20, %v2346_v2  ;;  %s3236_s12 = sld [smem:[#allocation49_spill]] }
  0xec   : >> { %v681_v5 = vrot.slane %v2334_v60, %v2326_v52  ;;  %v699_v8 = vrot.slane %v2334_v60, %v2337_v61  ;;  %v717_v21 = vrot.slane %v2334_v60, %v2342_v63  ;;  %v546_v27 = vmul.f32 %v545_v9, %v2339_v62  ;;  %s3237_s13 = sld [smem:[#allocation58_spill]] }
  0xed   : >> { %v687_v17 = vrot.slane %v2344_v1, %v2326_v52  ;;  %v705_v26 = vrot.slane %v2344_v1, %v2337_v61  ;;  %v553_v31 = vmul.f32 %v552_v12, %v2339_v62  ;;  %v735_v34 = vrot.slane %v2334_v60, %v2363_v13  ;;  %s3238_s14 = sld [smem:[#allocation61_spill]] }
  0xee   : >> { %v682_v19 = vmul.f32 %v681_v5, %v2348_v3  ;;  %v700_v23 = vmul.f32 %v699_v8, %v2348_v3  ;;  %v718_v37 = vmul.f32 %v717_v21, %v2348_v3  ;;  %v723_v38 = vrot.slane %v2344_v1, %v2342_v63  ;;  %s3242_s15 = sld [smem:[#allocation44_spill]] }
  0xef   : >> { %v688_v32 = vmul.f32 %v687_v17, %v2365_v16  ;;  %v706_v40 = vmul.f32 %v705_v26, %v2365_v16  ;;  %vm547_vm8 = vcmp.gt.f32.partialorder %v546_v27, 0.5  ;;  %v560_v41 = vmul.f32 %v559_v28, %v2339_v62  ;;  %s3245_s16 = sld [smem:[#allocation45_spill]] }
  0xf0   : >> { %v683_v35 = vadd.f32 %v682_v19, %v677_v18  ;;  %v701_v39 = vadd.f32 %v700_v23, %v695_v22  ;;  %v567_v42 = vmul.f32 %v566_v29, %v2339_v62  ;;  %vm554_vm9 = vcmp.gt.f32.partialorder %v553_v31, 0.5  ;;  %vm2409_vm10 = vmand %vm547_vm8, %vm3212_vm0  ;;  %s3246_s18 = sld [smem:[#allocation48_spill]] }
  0xf1   : >> { %v731_v43 = vmul.f32 %v730_v33, %v2346_v2  ;;  %v736_v44 = vmul.f32 %v735_v34, %v2348_v3  ;;  %v741_v45 = vrot.slane %v2344_v1, %v2363_v13  ;;  %v719_v47 = vadd.f32 %v718_v37, %v713_v36  ;;  %vm2420_vm11 = vmand %vm554_vm9, %vm506_vm1  ;;  %s3247_s19 = sld [smem:[#allocation62_spill]] }
  0xf2   : >> { %v689_v46 = vadd.f32 %v688_v32, %v683_v35  ;;  %v724_v48 = vmul.f32 %v723_v38, %v2365_v16  ;;  %v748_v49 = vrot.slane %v2332_v58, %v2385_v30  ;;  %v707_v53 = vadd.f32 %v706_v40, %v701_v39  ;;  %s3248_s20 = sld [smem:[#allocation60_spill]] }
  0xf3   : >> { %v753_v54 = vrot.slane %v2334_v60, %v2385_v30  ;;  %vm561_vm12 = vcmp.gt.f32.partialorder %v560_v41, 0.5  ;;  %v2425_v56 = vsub.s32 6, %v3194_v7  ;;  %vm568_vm13 = vcmp.gt.f32.partialorder %v567_v42, 0.5  ;;  %s3249_s21 = sld [smem:[#allocation63_spill]] }
  0xf4   : >> { %v573_v57 = vrot.slane %v2339_v62, %v2385_v30  ;;  %v737_v59 = vadd.f32 %v736_v44, %v731_v43  ;;  %v742_v0 = vmul.f32 %v741_v45, %v2365_v16  ;;  %v2432_v4 = vsel %vm2409_vm10, %v689_v46, -3.4028235e+38  ;;  %vm2439_vm14 = vmand %vm561_vm12, %vm507_vm2  ;;  %s3250_s23 = sld [smem:[#allocation64_spill]] }
  0xf5   : >> { %v725_v5 = vadd.f32 %v724_v48, %v719_v47  ;;  %v749_v6 = vmul.f32 %v748_v49, %v2346_v2  ;;  %v759_v8 = vrot.slane %v2344_v1, %v2385_v30  ;;  %v2445_v12 = vsel %vm2420_vm11, %v707_v53, -3.4028235e+38  ;;  %vm2463_vm15 = vmand %vm568_vm13, %vm508_vm3 }
  0xf6   : >> { %v754_v17 = vmul.f32 %v753_v54, %v2348_v3  ;;  %v766_v18 = vrot.slane %v2332_v58, %v2414_v51  ;;  %v771_v19 = vrot.slane %v2334_v60, %v2414_v51  ;;  %v2453_v20 = vsub.s32 7, %v3194_v7 }
  0xf7   : >> { %v574_v21 = vmul.f32 %v573_v57, %v2339_v62  ;;  %v580_v22 = vrot.slane %v2339_v62, %v2414_v51  ;;  %v743_v23 = vadd.f32 %v742_v0, %v737_v59  ;;  %v777_v26 = vrot.slane %v2344_v1, %v2414_v51 }
  0xf8   : >> { %v2469_v28 = vsel %vm2439_vm14, %v725_v5, -3.4028235e+38  ;;  %v760_v29 = vmul.f32 %v759_v8, %v2365_v16  ;;  %v784_v31 = vrot.slane %v2332_v58, %v2425_v56  ;;  %v817_v32 = vmax.f32 %v2432_v4, %v2445_v12 }
  0xf9   : >> { %v755_v33 = vadd.f32 %v754_v17, %v749_v6  ;;  %v767_v34 = vmul.f32 %v766_v18, %v2346_v2  ;;  %v772_v35 = vmul.f32 %v771_v19, %v2348_v3  ;;  %v789_v36 = vrot.slane %v2334_v60, %v2425_v56 }
  0xfa   : >> { %v587_v37 = vrot.slane %v2339_v62, %v2425_v56  ;;  %vm575_vm8 = vcmp.gt.f32.partialorder %v574_v21, 0.5  ;;  %v581_v38 = vmul.f32 %v580_v22, %v2339_v62  ;;  %v2485_v39 = vsel %vm2463_vm15, %v743_v23, -3.4028235e+38  ;;  %v2544_v22 = vld [vmem:[%s2526_s4 + $0x10] sm:$0xff] }
  0xfb   : >> { %v778_v40 = vmul.f32 %v777_v26, %v2365_v16  ;;  %v785_v41 = vmul.f32 %v784_v31, %v2346_v2  ;;  %v802_v42 = vrot.slane %v2332_v58, %v2453_v20  ;;  %v807_v43 = vrot.slane %v2334_v60, %v2453_v20  ;;  %vm2499_vm9 = vmand %vm575_vm8, %vm509_vm4 }
  0xfc   : >> { %v818_v44 = vmax.f32 %v817_v32, %v2469_v28  ;;  %v761_v45 = vadd.f32 %v760_v29, %v755_v33  ;;  %v773_v46 = vadd.f32 %v772_v35, %v767_v34  ;;  %v790_v47 = vmul.f32 %v789_v36, %v2348_v3 }
  0xfd   : >> { %v795_v48 = vrot.slane %v2344_v1, %v2425_v56  ;;  %v594_v58 = vrot.slane %v2339_v62, %v2453_v20  ;;  %vm582_vm12 = vcmp.gt.f32.partialorder %v581_v38, 0.5  ;;  %v588_v60 = vmul.f32 %v587_v37, %v2339_v62 }
  0xfe   : >> { %v803_v53 = vmul.f32 %v802_v42, %v2346_v2  ;;  %v808_v54 = vmul.f32 %v807_v43, %v2348_v3  ;;  %v813_v57 = vrot.slane %v2344_v1, %v2453_v20  ;;  %v819_v59 = vmax.f32 %v818_v44, %v2485_v39  ;;  %vm2518_vm13 = vmand %vm582_vm12, %vm510_vm5 }
  0xff   : >> { %v2513_v0 = vsel %vm2499_vm9, %v761_v45, -3.4028235e+38  ;;  %v779_v5 = vadd.f32 %v778_v40, %v773_v46  ;;  %v791_v6 = vadd.f32 %v790_v47, %v785_v41  ;;  %v796_v8 = vmul.f32 %v795_v48, %v2365_v16 }
 0x100   : >> { %v595_v1 = vmul.f32 %v594_v58, %v2339_v62  ;;  %vm589_vm8 = vcmp.gt.f32.partialorder %v588_v60, 0.5  ;;  %v809_v3 = vadd.f32 %v808_v54, %v803_v53  ;;  %v814_v17 = vmul.f32 %v813_v57, %v2365_v16  ;;  %v2541_v16 = vld [vmem:[%s2526_s4] sm:$0xff] }
 0x101   : >> { %v820_v18 = vmax.f32 %v819_v59, %v2513_v0  ;;  %v2532_v19 = vsel %vm2518_vm13, %v779_v5, -3.4028235e+38  ;;  %v797_v21 = vadd.f32 %v796_v8, %v791_v6  ;;  %vm2536_vm12 = vmand %vm589_vm8, %vm511_vm6  ;;  %v649_v23 = vstv %s3223_s10  ;;  %s3243_s10 = sld [smem:[#allocation47_spill]] }
 0x102   : >> { %vm596_vm0 = vcmp.gt.f32.partialorder %v595_v1, 0.5  ;;  %v651_v26 = vstv %s3224_s17  ;;  %v815_v29 = vadd.f32 %v814_v17, %v809_v3  ;;  %v3239_v32 = vmov 0  ;;  %s3244_s17 = sld [smem:[#allocation59_spill]] }
 0x103   : >> { %v821_v31 = vmax.f32 %v820_v18, %v2532_v19  ;;  %vm2551_vm8 = vmand %vm596_vm0, %vm512_vm7  ;;  %v2557_v33 = vsel %vm2536_vm12, %v797_v21, -3.4028235e+38  ;;  %v2560_v34 = vmul.f32 %v649_v23, %v2541_v16  ;;  %v2563_v35 = vmul.f32 %v2544_v22, %v651_v26 }
 0x104   : >> { %v3240_v32 = vsel %vm2551_vm8, 4294967295, %v3239_v32  ;;  %v1003_v37 = vstv %s3229_s5  ;;  %v657_v38 = vstv %s3230_s6  ;;  %v659_v40 = vstv %s3231_s9  ;;  %s3251_s5 = sld [smem:[#allocation50_spill]] }
 0x105   : >> { %3241 = vst [vmem:[#allocation80_spill] sm:$0xff] %v3240_v32  ;;  %v665_v41 = vstv %s3234_s8  ;;  %v1005_v42 = vstv %s3235_s11  ;;  %v2573_v43 = vsel %vm2551_vm8, %v815_v29, -3.4028235e+38  ;;  %v822_v44 = vmax.f32 %v821_v31, %v2557_v33  ;;  %s3252_s6 = sld [smem:[#allocation51_spill]] }
 0x106   : >> { %v1008_v45 = vstv %s3236_s12  ;;  %v1011_v46 = vstv %s3237_s13  ;;  %v1004_v47 = vmul.f32 %v1003_v37, %v2281_v10  ;;  %v1013_v48 = vstv %s3238_s14  ;;  %s3253_s9 = sld [smem:[#allocation65_spill]]  ;;  %s3266_s13 = scalar_lea.vmem [#allocation10], %s2125_s26 }
 0x107   : >> { %v1020_v58 = vstv %s3242_s15  ;;  %v1022_v60 = vstv %s3243_s10  ;;  %v1006_v53 = vmul.f32 %v2283_v11, %v1005_v42  ;;  %v1037_v57 = vstv %s3245_s16  ;;  %s3254_s12 = sld [smem:[#allocation66_spill]]  ;;  %s1411_s16 = scalar_lea.vmem %s3266_s13, %s2271_s7 [#allocation10] }
 0x108   : >> { %v1028_v54 = vstv %s3244_s17  ;;  %v1039_v59 = vstv %s3246_s18  ;;  %v1012_v5 = vmul.f32 %v1011_v46, %v2287_v14  ;;  %v1030_v6 = vstv %s3247_s19  ;;  %s3255_s11 = sld [smem:[#allocation72_spill]] }
 0x109   : >> { %v1045_v8 = vstv %s3248_s20  ;;  %v1047_v1 = vstv %s3249_s21  ;;  %v1014_v3 = vmul.f32 %v2289_v15, %v1013_v48  ;;  %v1016_v17 = vstv %s3250_s23  ;;  %s3256_s18 = sld [smem:[#allocation74_spill]] }
 0x10a   : >> { %v1021_v18 = vmul.f32 %v1020_v58, %v2281_v10  ;;  %v1023_v21 = vmul.f32 %v2283_v11, %v1022_v60  ;;  %v1025_v23 = vstv %s3251_s5  ;;  %v1029_v26 = vmul.f32 %v1028_v54, %v2287_v14  ;;  %s3257_s19 = sld [smem:[#allocation75_spill]] }
 0x10b   : >> { %v1038_v29 = vmul.f32 %v1037_v57, %v2281_v10  ;;  %v1040_v31 = vmul.f32 %v2283_v11, %v1039_v59  ;;  %v1031_v37 = vmul.f32 %v2289_v15, %v1030_v6  ;;  %v1042_v42 = vstv %s3252_s6  ;;  %s3260_s20 = sld [smem:[#allocation76_spill]] }
 0x10c   : >> { %v1046_v46 = vmul.f32 %v1045_v8, %v2287_v14  ;;  %v1048_v48 = vmul.f32 %v2289_v15, %v1047_v1  ;;  %v1007_v36 = vadd.f32 %v1006_v53, %v1004_v47  ;;  %v1009_v58 = vmul.f32 %v2299_v24, %v1008_v45  ;;  %v2615_v8 = vld [vmem:[%s2526_s4 + $0x20] sm:$0xff]  ;;  %s3261_s21 = sld [smem:[#allocation77_spill]] }
 0x10d   : >> { %v1033_v7 = vstv %s3253_s9  ;;  %v1050_v60 = vstv %s3254_s12  ;;  %v2607_v54 = vmax.f32 %v822_v44, %v2573_v43  ;;  %v1024_v10 = vadd.f32 %v1023_v21, %v1021_v18  ;;  %s3262_s15 = sld [smem:[#allocation78_spill]] }
 0x10e   : >> { %v667_v32 = vstv %s3255_s11  ;;  %v1026_v11 = vmul.f32 %v2299_v24, %v1025_v23  ;;  %v1015_v57 = vadd.f32 %v1014_v3, %v1012_v5  ;;  %v1017_v59 = vmul.f32 %v2301_v25, %v1016_v17  ;;  %s3263_s14 = sld [smem:[#allocation79_spill]] }
 0x10f   : >> { %v1041_v14 = vadd.f32 %v1040_v31, %v1038_v29  ;;  %v1043_v15 = vmul.f32 %v2299_v24, %v1042_v42  ;;  %v1032_v47 = vadd.f32 %v1031_v37, %v1029_v26  ;;  %v1034_v45 = vmul.f32 %v2301_v25, %v1033_v7  ;;  %s3267_s23 = sld [smem:[#allocation32_spill]] (%p515_p11) }
 0x110   : >> { %v1049_v53 = vadd.f32 %v1048_v48, %v1046_v46  ;;  %v1051_v6 = vmul.f32 %v2301_v25, %v1050_v60  ;;  %v658_v44 = vmul.f32 %v657_v38, %v2541_v16  ;;  %v660_v1 = vmul.f32 %v2544_v22, %v659_v40 }
 0x111   : >> { %v662_v5 = vstv %s3256_s18  ;;  %v1010_v3 = vadd.f32 %v1009_v58, %v1007_v36  ;;  %v666_v17 = vmul.f32 %v665_v41, %v2541_v16  ;;  %v668_v18 = vmul.f32 %v2544_v22, %v667_v32 }
 0x112   : >> { %v824_v24 = vsub.f32 %v2432_v4, %v2607_v54  ;;  %v1027_v7 = vadd.f32 %v1026_v11, %v1024_v10  ;;  %v670_v21 = vstv %s3257_s19  ;;  %v2625_v23 = vadd.f32 %v1017_v59, %v1015_v57 }
 0x113   : >> { %v1044_v25 = vadd.f32 %v1043_v15, %v1041_v14  ;;  %v2629_v26 = vadd.f32 %v2563_v35, %v2560_v34  ;;  %v3258_v38 = vstv %s3228_s1  ;;  %v2636_v36 = vadd.f32 %v1034_v45, %v1032_v47 }
 0x114   : >> { %v2634_v40 = vmul.f32 %v2615_v8, %v3258_v38  ;;  %v2638_v41 = vadd.f32 %v1051_v6, %v1049_v53  ;;  %v2640_v32 = vadd.f32 %v660_v1, %v658_v44  ;;  %v2643_v4 = vmul.f32 %v2615_v8, %v662_v5 }
 0x115   : >> { %v827_v29 = vsub.f32 %v2445_v12, %v2607_v54  ;;  %v2647_v31 = vmul.f32 0.57735026, %v1010_v3  ;;  %v2649_v34 = vadd.f32 %v668_v18, %v666_v17  ;;  %v2652_v35 = vmul.f32 %v2615_v8, %v670_v21  ;;  %s1418_s4 = scalar_lea.sflag (%p515_p11), [#allocation4], %s3267_s23 }
 0x116   : >> { %v825_v37 = vmul.f32 1.442695, %v824_v24  ;;  %v2654_v42 = vmul.f32 0.57735026, %v1027_v7  ;;  %v830_v46 = vsub.f32 %v2469_v28, %v2607_v54  ;;  %v833_v48 = vsub.f32 %v2485_v39, %v2607_v54 }
 0x117   : >> { %v2660_v58 = vmul.f32 0.57735026, %v1044_v25  ;;  %v1081_v12 = vrot.slane %v2625_v23, %v2326_v52  ;;  %v1086_v60 = vrot.slane %v2636_v36, %v2326_v52  ;;  %v1092_v10 = vrot.slane %v2638_v41, %v2326_v52 }
 0x118   : >> { %v1099_v11 = vrot.slane %v2625_v23, %v2337_v61  ;;  %v1104_v28 = vrot.slane %v2636_v36, %v2337_v61  ;;  %v828_v57 = vmul.f32 1.442695, %v827_v29  ;;  %v1110_v59 = vrot.slane %v2638_v41, %v2337_v61 }
 0x119   : >> { %v1082_v39 = vmul.f32 %v1081_v12, %v2647_v31  ;;  %v1117_v14 = vrot.slane %v2625_v23, %v2342_v63  ;;  %1832 = vpow2.f32 %v825_v37  ;;  %v1087_v15 = vmul.f32 %v1086_v60, %v2654_v42 }
 0x11a   : >> { %v1100_v47 = vmul.f32 %v1099_v11, %v2647_v31  ;;  %v1105_v45 = vmul.f32 %v1104_v28, %v2654_v42  ;;  %v1093_v53 = vmul.f32 %v1092_v10, %v2660_v58  ;;  %v1111_v6 = vmul.f32 %v1110_v59, %v2660_v58 }
 0x11b   : >> { %v1118_v44 = vmul.f32 %v1117_v14, %v2647_v31  ;;  %v1122_v1 = vrot.slane %v2636_v36, %v2342_v63  ;;  %v1088_v5 = vadd.f32 %v1087_v15, %v1082_v39  ;;  %v1128_v17 = vrot.slane %v2638_v41, %v2342_v63 }
 0x11c   : >> { %v1106_v3 = vadd.f32 %v1105_v45, %v1100_v47  ;;  %v1135_v18 = vrot.slane %v2625_v23, %v2363_v13  ;;  %v1140_v7 = vrot.slane %v2636_v36, %v2363_v13  ;;  %v1146_v21 = vrot.slane %v2638_v41, %v2363_v13 }
 0x11d   : >> { %v1123_v24 = vmul.f32 %v1122_v1, %v2654_v42  ;;  %v1153_v25 = vrot.slane %v2625_v23, %v2385_v30  ;;  %1834 = vpow2.f32 %v828_v57  ;;  %v831_v38 = vmul.f32 1.442695, %v830_v46 }
 0x11e   : >> { %v836_v29 = vsub.f32 %v2513_v0, %v2607_v54  ;;  %v1136_v37 = vmul.f32 %v1135_v18, %v2647_v31  ;;  %v1094_v12 = vadd.f32 %v1093_v53, %v1088_v5  ;;  %v1129_v10 = vmul.f32 %v1128_v17, %v2660_v58 }
 0x11f   : >> { %v1124_v60 = vadd.f32 %v1123_v24, %v1118_v44  ;;  %v1141_v11 = vmul.f32 %v1140_v7, %v2654_v42  ;;  %v1112_v28 = vadd.f32 %v1111_v6, %v1106_v3  ;;  %v1154_v39 = vmul.f32 %v1153_v25, %v2647_v31 }
 0x120   : >> { %v1158_v59 = vrot.slane %v2636_v36, %v2385_v30  ;;  %v1164_v46 = vrot.slane %v2638_v41, %v2385_v30  ;;  %v1147_v0 = vmul.f32 %v1146_v21, %v2660_v58  ;;  %v1171_v14 = vrot.slane %v2625_v23, %v2414_v51 }
 0x121   : >> { %v1142_v57 = vadd.f32 %v1141_v11, %v1136_v37  ;;  %v1176_v15 = vrot.slane %v2636_v36, %v2414_v51  ;;  %v834_v47 = vmul.f32 1.442695, %v833_v48  ;;  %v1182_v53 = vrot.slane %v2638_v41, %v2414_v51 }
 0x122   : >> { %v1159_v45 = vmul.f32 %v1158_v59, %v2654_v42  ;;  %v1189_v6 = vrot.slane %v2625_v23, %v2425_v56  ;;  %1836 = vpow2.f32 %v831_v38  ;;  %v1130_v44 = vadd.f32 %v1129_v10, %v1124_v60 }
 0x123   : >> { %v1172_v1 = vmul.f32 %v1171_v14, %v2647_v31  ;;  %v1177_v5 = vmul.f32 %v1176_v15, %v2654_v42  ;;  %v2720_v3 = vsel %vm2409_vm10, %v1094_v12, -3.4028235e+38  ;;  %v2724_v48 = vsel %vm2420_vm11, %v1112_v28, -3.4028235e+38 }
 0x124   : >> { %v1160_v17 = vadd.f32 %v1159_v45, %v1154_v39  ;;  %v1165_v18 = vmul.f32 %v1164_v46, %v2660_v58  ;;  %v1148_v24 = vadd.f32 %v1147_v0, %v1142_v57  ;;  %v1190_v7 = vmul.f32 %v1189_v6, %v2647_v31 }
 0x125   : >> { %v1194_v21 = vrot.slane %v2636_v36, %v2425_v56  ;;  %v1200_v25 = vrot.slane %v2638_v41, %v2425_v56  ;;  %v1178_v38 = vadd.f32 %v1177_v5, %v1172_v1  ;;  %v1183_v50 = vmul.f32 %v1182_v53, %v2660_v58 }
 0x126   : >> { %v1207_v55 = vrot.slane %v2625_v23, %v2453_v20  ;;  %v1212_v37 = vrot.slane %v2636_v36, %v2453_v20  ;;  %v2737_v12 = vpop.eup %1832  ;;  %v839_v60 = vsub.f32 %v2532_v19, %v2607_v54  ;;  %v2743_v10 = vsel %vm2439_vm14, %v1130_v44, -3.4028235e+38 }
 0x127   : >> { %v1195_v11 = vmul.f32 %v1194_v21, %v2654_v42  ;;  %v1218_v28 = vrot.slane %v2638_v41, %v2453_v20  ;;  %v1166_v39 = vadd.f32 %v1165_v18, %v1160_v17  ;;  %v1201_v23 = vmul.f32 %v1200_v25, %v2660_v58 }
 0x128   : >> { %v1208_v59 = vmul.f32 %v1207_v55, %v2647_v31  ;;  %v1213_v36 = vmul.f32 %v1212_v37, %v2654_v42  ;;  %1838 = vpow2.f32 %v834_v47  ;;  %v837_v46 = vmul.f32 1.442695, %v836_v29 }
 0x129   : >> { %v1196_v57 = vadd.f32 %v1195_v11, %v1190_v7  ;;  %v1222_v9 = vmax.f32 %v2720_v3, %v2724_v48  ;;  %v2755_v19 = vsel %vm2463_vm15, %v1148_v24, -3.4028235e+38  ;;  %v1184_v0 = vadd.f32 %v1183_v50, %v1178_v38 }
 0x12a   : >> { %v1214_v14 = vadd.f32 %v1213_v36, %v1208_v59  ;;  %v1219_v41 = vmul.f32 %v1218_v28, %v2660_v58  ;;  %v2758_v15 = vpop.eup %1834  ;;  %v2763_v42 = vadd.f32 %v2634_v40, %v2629_v26  ;;  %v842_v29 = vsub.f32 %v2557_v33, %v2607_v54 }
 0x12b   : >> { %v1223_v31 = vmax.f32 %v1222_v9, %v2743_v10  ;;  %v2769_v27 = vsel %vm2499_vm9, %v1166_v39, -3.4028235e+38  ;;  %v1202_v47 = vadd.f32 %v1201_v23, %v1196_v57  ;;  %v2773_v45 = vadd.f32 %v2643_v4, %v2640_v32 }
 0x12c   : >> { %1840 = vpow2.f32 %v837_v46  ;;  %v845_v58 = vsub.f32 %v2573_v43, %v2607_v54  ;;  %v2780_v26 = vadd.f32 %v2652_v35, %v2649_v34  ;;  %v840_v33 = vmul.f32 1.442695, %v839_v60 }
 0x12d   : >> { %v1224_v53 = vmax.f32 %v1223_v31, %v2755_v19  ;;  %v2784_v49 = vsel %vm2518_vm13, %v1184_v0, -3.4028235e+38  ;;  %v1220_v40 = vadd.f32 %v1219_v41, %v1214_v14  ;;  %v843_v6 = vmul.f32 1.442695, %v842_v29 }
 0x12e   : >> { %v862_v43 = vrot.slane %v2763_v42, %v2326_v52  ;;  %v2793_v54 = vsel %vm2536_vm12, %v1202_v47, -3.4028235e+38  ;;  %v846_v34 = vmul.f32 1.442695, %v845_v58  ;;  %v848_v2 = vadd.f32 %v2758_v15, %v2737_v12 }
 0x12f   : >> { %v1225_v32 = vmax.f32 %v1224_v53, %v2769_v27  ;;  %v2787_v4 = vpop.eup %1836  ;;  %v867_v35 = vrot.slane %v2773_v45, %v2326_v52  ;;  %1842 = vpow2.f32 %v840_v33  ;;  %v872_v1 = vrot.slane %v2780_v26, %v2326_v52 }
 0x130   : >> { %v877_v5 = vrot.slane %v2763_v42, %v2337_v61  ;;  %v2806_v62 = vsel %vm2551_vm8, %v1220_v40, -3.4028235e+38  ;;  %v883_v18 = vrot.slane %v2773_v45, %v2337_v61  ;;  %v1054_v24 = vstv %s2246_s28 }
 0x131   : >> { %v1226_v44 = vmax.f32 %v1225_v32, %v2784_v49  ;;  %v1056_v7 = vstv %s2252_s22  ;;  %1844 = vpow2.f32 %v843_v6  ;;  %v889_v25 = vrot.slane %v2780_v26, %v2337_v61 }
 0x132   : >> { %v895_v38 = vrot.slane %v2763_v42, %v2342_v63  ;;  %v901_v50 = vrot.slane %v2773_v45, %v2342_v63  ;;  %1846 = vpow2.f32 %v846_v34  ;;  %v849_v55 = vadd.f32 %v2787_v4, %v848_v2 }
 0x133   : >> { %v1227_v21 = vmax.f32 %v1226_v44, %v2793_v54  ;;  %v907_v37 = vrot.slane %v2780_v26, %v2342_v63  ;;  %v1055_v28 = vmul.f32 %v1054_v24, %v2541_v16  ;;  %v1057_v39 = vmul.f32 %v2544_v22, %v1056_v7 }
 0x134   : >> { %v1059_v23 = vstv %s2258_s2  ;;  %v1062_v59 = vstv %s2248_s3  ;;  %v1064_v0 = vstv %s2254_s29  ;;  %v1070_v14 = vstv %s3260_s20 }
 0x135   : >> { %v1228_v60 = vmax.f32 %v1227_v21, %v2806_v62  ;;  %v2823_v11 = vpop.eup %1838  ;;  %v1072_v41 = vstv %s3261_s21  ;;  %v1071_v32 = vmul.f32 %v1070_v14, %v2541_v16  ;;  %v913_v17 = vrot.slane %v2763_v42, %v2363_v13 }
 0x136   : >> { %v850_v29 = vadd.f32 %v2823_v11, %v849_v55  ;;  %v1073_v6 = vmul.f32 %v2544_v22, %v1072_v41  ;;  %v1060_v24 = vmul.f32 %v2615_v8, %v1059_v23  ;;  %v925_v23 = vrot.slane %v2780_v26, %v2363_v13 }
 0x137   : >> { %v1229_v36 = vsub.f32 %v2720_v3, %v1228_v60  ;;  %v1232_v46 = vsub.f32 %v2724_v48, %v1228_v60  ;;  %v1235_v57 = vsub.f32 %v2743_v10, %v1228_v60  ;;  %v1238_v9 = vsub.f32 %v2755_v19, %v1228_v60 }
 0x138   : >> { %v1241_v31 = vsub.f32 %v2769_v27, %v1228_v60  ;;  %v1063_v3 = vmul.f32 %v1062_v59, %v2541_v16  ;;  %v1067_v48 = vstv %s3262_s15  ;;  %v1244_v10 = vsub.f32 %v2784_v49, %v1228_v60 }
 0x139   : >> { %v1230_v47 = vmul.f32 1.442695, %v1229_v36  ;;  %v1233_v58 = vmul.f32 1.442695, %v1232_v46  ;;  %v1236_v53 = vmul.f32 1.442695, %v1235_v57  ;;  %v2838_v33 = vpop.eup %1840  ;;  %v1065_v19 = vmul.f32 %v2544_v22, %v1064_v0 }
 0x13a   : >> { %v1239_v40 = vmul.f32 1.442695, %v1238_v9  ;;  %v1075_v27 = vstv %s3263_s14  ;;  %v1242_v34 = vmul.f32 1.442695, %v1241_v31  ;;  %v1247_v2 = vsub.f32 %v2793_v54, %v1228_v60 }
 0x13b   : >> { %1848 = vpow2.f32 %v1230_v47  ;;  %v851_v44 = vadd.f32 %v2838_v33, %v850_v29  ;;  %v1058_v49 = vadd.f32 %v1057_v39, %v1055_v28  ;;  %v1245_v7 = vmul.f32 1.442695, %v1244_v10 }
 0x13c   : >> { %1850 = vpow2.f32 %v1233_v58  ;;  %v1250_v16 = vsub.f32 %v2806_v62, %v1228_v60  ;;  %v2853_v22 = vpop.eup %1842  ;;  %v1066_v21 = vadd.f32 %v1065_v19, %v1063_v3  ;;  %v1068_v55 = vmul.f32 %v2615_v8, %v1067_v48 }
 0x13d   : >> { %1852 = vpow2.f32 %v1236_v53  ;;  %v1074_v59 = vadd.f32 %v1073_v6, %v1071_v32  ;;  %v1076_v54 = vmul.f32 %v2615_v8, %v1075_v27  ;;  %v919_v36 = vrot.slane %v2773_v45, %v2363_v13 }
 0x13e   : >> { %1854 = vpow2.f32 %v1239_v40  ;;  %v1248_v28 = vmul.f32 1.442695, %v1247_v2  ;;  %v2861_v39 = vpop.eup %1844  ;;  %v931_v62 = vrot.slane %v2763_v42, %v2385_v30  ;;  %v937_v60 = vrot.slane %v2773_v45, %v2385_v30 }
 0x13f   : >> { %1856 = vpow2.f32 %v1242_v34  ;;  %v943_v46 = vrot.slane %v2780_v26, %v2385_v30  ;;  %v949_v8 = vrot.slane %v2763_v42, %v2414_v51  ;;  %v2871_v57 = vpop.eup %1846  ;;  %v852_v9 = vadd.f32 %v2853_v22, %v851_v44 }
 0x140   : >> { %v955_v0 = vrot.slane %v2773_v45, %v2414_v51  ;;  %1858 = vpow2.f32 %v1245_v7  ;;  %v1251_v14 = vmul.f32 1.442695, %v1250_v16  ;;  %v961_v41 = vrot.slane %v2780_v26, %v2414_v51 }
 0x141   : >> { %v2878_v31 = vadd.f32 %v1060_v24, %v1058_v49  ;;  %v2880_v29 = vadd.f32 %v1068_v55, %v1066_v21  ;;  %v2882_v47 = vadd.f32 %v1076_v54, %v1074_v59  ;;  %v967_v58 = vrot.slane %v2763_v42, %v2425_v56 }
 0x142   : >> { %v973_v53 = vrot.slane %v2773_v45, %v2425_v56  ;;  %v979_v3 = vrot.slane %v2780_v26, %v2425_v56  ;;  %1860 = vpow2.f32 %v1248_v28  ;;  %v863_v48 = vmul.f32 %v2737_v12, %v862_v43 }
 0x143   : >> { %v878_v40 = vmul.f32 %v2758_v15, %v877_v5  ;;  %v853_v32 = vadd.f32 %v2861_v39, %v852_v9  ;;  %v868_v6 = vmul.f32 %v2737_v12, %v867_v35  ;;  %v873_v43 = vmul.f32 %v2737_v12, %v872_v1 }
 0x144   : >> { %1862 = vpow2.f32 %v1251_v14  ;;  %v884_v5 = vmul.f32 %v2758_v15, %v883_v18  ;;  %v1267_v27 = vrot.slane %v2878_v31, %v2326_v52  ;;  %v1272_v34 = vrot.slane %v2880_v29, %v2326_v52 }
 0x145   : >> { %v1277_v35 = vrot.slane %v2882_v47, %v2326_v52  ;;  %v890_v12 = vmul.f32 %v2758_v15, %v889_v25  ;;  %v1282_v1 = vrot.slane %v2878_v31, %v2337_v61  ;;  %v1288_v18 = vrot.slane %v2880_v29, %v2337_v61 }
 0x146   : >> { %v1294_v44 = vrot.slane %v2882_v47, %v2337_v61  ;;  %v879_v49 = vadd.f32 %v878_v40, %v863_v48  ;;  %v896_v52 = vmul.f32 %v2787_v4, %v895_v38  ;;  %v902_v15 = vmul.f32 %v2787_v4, %v901_v50 }
 0x147   : >> { %v908_v25 = vmul.f32 %v2787_v4, %v907_v37  ;;  %v2944_v61 = vadd.f32 %v2871_v57, %v853_v32  ;;  %v1300_v21 = vrot.slane %v2878_v31, %v2342_v63  ;;  %v1306_v38 = vrot.slane %v2880_v29, %v2342_v63 }
 0x148   : >> { %v1849_v2 = vpop.eup %1848  ;;  %v1312_v28 = vrot.slane %v2882_v47, %v2342_v63  ;;  %v885_v40 = vadd.f32 %v884_v5, %v868_v6  ;;  %v891_v32 = vadd.f32 %v890_v12, %v873_v43  ;;  %v914_v19 = vmul.f32 %v2823_v11, %v913_v17 }
 0x149   : >> { %v1851_v24 = vpop.eup %1850  ;;  %v1268_v59 = vmul.f32 %v1849_v2, %v1267_v27  ;;  %v1273_v54 = vmul.f32 %v1849_v2, %v1272_v34  ;;  %v1278_v50 = vmul.f32 %v1849_v2, %v1277_v35  ;;  %v920_v10 = vmul.f32 %v2823_v11, %v919_v36 }
 0x14a   : >> { %v1853_v7 = vpop.eup %1852  ;;  %v1253_v16 = vadd.f32 %v1851_v24, %v1849_v2  ;;  %v1283_v4 = vmul.f32 %v1851_v24, %v1282_v1  ;;  %v1289_v37 = vmul.f32 %v1851_v24, %v1288_v18  ;;  %v1295_v14 = vmul.f32 %v1851_v24, %v1294_v44 }
 0x14b   : >> { %v1855_v55 = vpop.eup %1854  ;;  %1864 = vrcp.f32 %v2944_v61  ;;  %v1318_v63 = vrot.slane %v2878_v31, %v2363_v13  ;;  %v1324_v34 = vrot.slane %v2880_v29, %v2363_v13  ;;  %v1301_v2 = vmul.f32 %v1853_v7, %v1300_v21 }
 0x14c   : >> { %v1254_v9 = vadd.f32 %v1853_v7, %v1253_v16  ;;  %v1857_v48 = vpop.eup %1856  ;;  %v1307_v6 = vmul.f32 %v1853_v7, %v1306_v38  ;;  %v1313_v43 = vmul.f32 %v1853_v7, %v1312_v28  ;;  %v1330_v5 = vrot.slane %v2882_v47, %v2363_v13 }
 0x14d   : >> { %v1859_v35 = vpop.eup %1858  ;;  %v1284_v17 = vadd.f32 %v1283_v4, %v1268_v59  ;;  %v1290_v1 = vadd.f32 %v1289_v37, %v1273_v54  ;;  %v1296_v36 = vadd.f32 %v1295_v14, %v1278_v50  ;;  %v897_v44 = vadd.f32 %v896_v52, %v879_v49 }
 0x14e   : >> { %v1255_v27 = vadd.f32 %v1855_v55, %v1254_v9  ;;  %v903_v24 = vadd.f32 %v902_v15, %v885_v40  ;;  %v926_v16 = vmul.f32 %v2823_v11, %v925_v23  ;;  %v932_v7 = vmul.f32 %v2838_v33, %v931_v62 }
 0x14f   : >> { %v2964_v18 = vpop.eup %1860  ;;  %v909_v21 = vadd.f32 %v908_v25, %v891_v32  ;;  %v1336_v59 = vrot.slane %v2878_v31, %v2385_v30  ;;  %v1342_v54 = vrot.slane %v2880_v29, %v2385_v30  ;;  %v1319_v52 = vmul.f32 %v1855_v55, %v1318_v63 }
 0x150   : >> { %v1256_v12 = vadd.f32 %v1857_v48, %v1255_v27  ;;  %v1325_v15 = vmul.f32 %v1855_v55, %v1324_v34  ;;  %v1331_v13 = vmul.f32 %v1855_v55, %v1330_v5  ;;  %v1348_v11 = vrot.slane %v2882_v47, %v2385_v30 }
 0x151   : >> { %v2978_v49 = vpop.eup %1862  ;;  %v1302_v50 = vadd.f32 %v1301_v2, %v1284_v17  ;;  %v1308_v62 = vadd.f32 %v1307_v6, %v1290_v1  ;;  %v1314_v25 = vadd.f32 %v1313_v43, %v1296_v36  ;;  %v915_v28 = vadd.f32 %v914_v19, %v897_v44 }
 0x152   : >> { %v1257_v38 = vadd.f32 %v1859_v35, %v1256_v12  ;;  %v921_v9 = vadd.f32 %v920_v10, %v903_v24  ;;  %v938_v4 = vmul.f32 %v2838_v33, %v937_v60  ;;  %v944_v55 = vmul.f32 %v2838_v33, %v943_v46 }
 0x153   : >> { %v927_v37 = vadd.f32 %v926_v16, %v909_v21  ;;  %v1354_v40 = vrot.slane %v2878_v31, %v2414_v51  ;;  %v1360_v19 = vrot.slane %v2880_v29, %v2414_v51  ;;  %v1337_v10 = vmul.f32 %v1857_v48, %v1336_v59 }
 0x154   : >> { %v1258_v23 = vadd.f32 %v2964_v18, %v1257_v38  ;;  %v1343_v32 = vmul.f32 %v1857_v48, %v1342_v54  ;;  %v1349_v27 = vmul.f32 %v1857_v48, %v1348_v11  ;;  %v1366_v60 = vrot.slane %v2882_v47, %v2414_v51 }
 0x155   : >> { %v1320_v63 = vadd.f32 %v1319_v52, %v1302_v50  ;;  %v1326_v30 = vadd.f32 %v1325_v15, %v1308_v62  ;;  %v1332_v34 = vadd.f32 %v1331_v13, %v1314_v25  ;;  %v933_v33 = vadd.f32 %v932_v7, %v915_v28 }
 0x156   : >> { %v1259_v14 = vadd.f32 %v2978_v49, %v1258_v23  ;;  %v950_v46 = vmul.f32 %v2853_v22, %v949_v8  ;;  %v956_v2 = vmul.f32 %v2853_v22, %v955_v0  ;;  %v997_v48 = vrot.slane %v2780_v26, %v2453_v20 }
 0x157   : >> { %v939_v6 = vadd.f32 %v938_v4, %v921_v9  ;;  %v945_v43 = vadd.f32 %v944_v55, %v927_v37  ;;  %v962_v5 = vmul.f32 %v2853_v22, %v961_v41  ;;  %v1372_v12 = vrot.slane %v2878_v31, %v2425_v56 }
 0x158   : >> { %1866 = vrcp.f32 %v1259_v14  ;;  %v1865_v17 = vpop.eup %1864  ;;  %v1355_v8 = vmul.f32 %v1859_v35, %v1354_v40  ;;  %v1361_v1 = vmul.f32 %v1859_v35, %v1360_v19  ;;  %v1378_v36 = vrot.slane %v2880_v29, %v2425_v56 }
 0x159   : >> { %v1384_v0 = vrot.slane %v2882_v47, %v2425_v56  ;;  %v1338_v44 = vadd.f32 %v1337_v10, %v1320_v63  ;;  %v1344_v24 = vadd.f32 %v1343_v32, %v1326_v30  ;;  %v1350_v16 = vadd.f32 %v1349_v27, %v1332_v34 }
 0x15a   : >> { %v1367_v7 = vmul.f32 %v1859_v35, %v1366_v60  ;;  %v951_v21 = vadd.f32 %v950_v46, %v933_v33  ;;  %v968_v51 = vmul.f32 %v2861_v39, %v967_v58  ;;  %v974_v22 = vmul.f32 %v2861_v39, %v973_v53 }
 0x15b   : >> { %v980_v41 = vmul.f32 %v2861_v39, %v979_v3  ;;  %v856_v38 = vmul.f32 %v1865_v17, %v2944_v61  ;;  %v957_v59 = vadd.f32 %v956_v2, %v939_v6  ;;  %v963_v35 = vadd.f32 %v962_v5, %v945_v43 }
 0x15c   : >> { %v1390_v54 = vrot.slane %v2878_v31, %v2453_v20  ;;  %v1373_v52 = vmul.f32 %v2964_v18, %v1372_v12  ;;  %v1379_v58 = vmul.f32 %v2964_v18, %v1378_v36  ;;  %v1396_v15 = vrot.slane %v2880_v29, %v2453_v20 }
 0x15d   : >> { %v1402_v53 = vrot.slane %v2882_v47, %v2453_v20  ;;  %v1356_v56 = vadd.f32 %v1355_v8, %v1338_v44  ;;  %v1362_v26 = vadd.f32 %v1361_v1, %v1344_v24  ;;  %v1368_v39 = vadd.f32 %v1367_v7, %v1350_v16 }
 0x15e   : >> { %v1385_v3 = vmul.f32 %v2964_v18, %v1384_v0  ;;  %v969_v61 = vadd.f32 %v968_v51, %v951_v21  ;;  %v3264_v13 = vrot.slane %v2763_v42, %v2453_v20  ;;  %v3265_v11 = vrot.slane %v2773_v45, %v2453_v20 }
 0x15f   : >> { %v857_v29 = vsub.f32 2.0, %v856_v38  ;;  %v975_v50 = vadd.f32 %v974_v22, %v957_v59  ;;  %v981_v62 = vadd.f32 %v980_v41, %v963_v35  ;;  %v998_v47 = vmul.f32 %v2871_v57, %v997_v48 }
 0x160   : >> { %v986_v31 = vmul.f32 %v2871_v57, %v3264_v13  ;;  %v992_v23 = vmul.f32 %v2871_v57, %v3265_v11  ;;  %v1391_v25 = vmul.f32 %v2978_v49, %v1390_v54  ;;  %v1397_v18 = vmul.f32 %v2978_v49, %v1396_v15 }
 0x161   : >> { %v1374_v28 = vadd.f32 %v1373_v52, %v1356_v56  ;;  %v1380_v9 = vadd.f32 %v1379_v58, %v1362_v26  ;;  %v1386_v4 = vadd.f32 %v1385_v3, %v1368_v39  ;;  %v1403_v42 = vmul.f32 %v2978_v49, %v1402_v53 }
 0x162   : >> { %v987_v37 = vadd.f32 %v986_v31, %v969_v61  ;;  %v858_v20 = vmul.f32 %v1865_v17, %v857_v29  ;;  %v993_v45 = vadd.f32 %v992_v23, %v975_v50  ;;  %v999_v40 = vadd.f32 %v998_v47, %v981_v62 }
 0x163   : >> { %v1392_v32 = vadd.f32 %v1391_v25, %v1374_v28  ;;  %v1398_v57 = vadd.f32 %v1397_v18, %v1380_v9  ;;  %v1404_v27 = vadd.f32 %v1403_v42, %v1386_v4 }
 0x164   : >> { %v1000_v60 = vmul.f32 %v987_v37, %v858_v20  ;;  %v1001_v63 = vmul.f32 %v993_v45, %v858_v20  ;;  %v1002_v30 = vmul.f32 %v999_v40, %v858_v20 }
 0x165   : >> { %v1867_v55 = vpop.eup %1866 }
 0x166   : >> { %v1261_v19 = vmul.f32 %v1867_v55, %v1259_v14 }
 0x168   : >> { %v1262_v10 = vsub.f32 2.0, %v1261_v19 }
 0x16a   : >> { %v1263_v34 = vmul.f32 %v1867_v55, %v1262_v10 }
 0x16c   : >> { %v1405_v33 = vmul.f32 %v1392_v32, %v1263_v34  ;;  %v1407_v46 = vmul.f32 %v1398_v57, %v1263_v34  ;;  %v1409_v2 = vmul.f32 %v1404_v27, %v1263_v34 }
 0x16d   : > { %517 = sbr.rel (!%p515_p11) target bundleno = 212 (0xd4), region = 187 }
 0x16e   : >> { %v1406_v49 = vadd.f32 %v1405_v33, %v1000_v60  ;;  %v1408_v48 = vadd.f32 %v1407_v46, %v1001_v63  ;;  %v1410_v6 = vadd.f32 %v1409_v2, %v1002_v30 }
 0x170   : >> { %1412 = vst [vmem:[%s1411_s16] sm:$0xff] %v1406_v49  ;;  %1716 = vst [vmem:[%s1411_s16 + $0x10] sm:$0xff] %v1408_v48 }
 0x171   : >> { %1718 = vst [vmem:[%s1411_s16 + $0x20] sm:$0xff] %v1410_v6 }
 0x172   : > { %s3268_s8 = sld [smem:[#allocation27_spill]]  ;;  %s3270_s17 = scalar_lea.vmem [#allocation10], %s2125_s26 }
 0x173   : > { %s3269_s10 = sld [smem:[#allocation30_spill]]  ;;  %s1441_s5 = sshll.u32 %s3270_s17, 4  ;;  %s1442_s5 = int_to_ptr.vmem [resolvable:$true] %s1441_s5 }
 0x174   : > { %s3271_s12 = sld [smem:[#allocation86_spill]]  ;;  %s1952_s0 = smov 256  }
 0x175   : > { %s1953_s3 = smov 512   ;;  %s1954_s22 = smov 2  }
 0x176   : > { %s1955_s24 = smov 128   ;;  %s1956_s27 = smov 8  }
 0x177   : > { %s1957_s30 = smov 131072   ;;  %s1958_s2 = smov 0  }
 0x178   : > { %s1726_s7 = sshll.u32 %s3268_s8, 8 }
 0x179   : > { %p3272_p12 = scmp.ne.s32.totalorder %s3269_s10, 0 }
 0x17a   : > { %s1430_s11 = scalar_lea.hbm %s3271_s12, %s1726_s7 }
 0x17b   : > { %1753 = sst [smem:[#allocation16]] (%p3272_p12), %s1952_s0 }
 0x17c   : > { %1754 = sst [smem:[#allocation16 + $0x1]] (%p3272_p12), %s1953_s3 }
 0x17d   : > { %1755 = sst [smem:[#allocation16 + $0x2]] (%p3272_p12), %s1954_s22 }
 0x17e   : > { %1756 = sst [smem:[#allocation16 + $0x3]] (%p3272_p12), %s1955_s24 }
 0x17f   : > { %1757 = sst [smem:[#allocation16 + $0x4]] (%p3272_p12), %s1955_s24 }
 0x180   : > { %1758 = sst [smem:[#allocation16 + $0x5]] (%p3272_p12), %s1956_s27 }
 0x181   : > { %1759 = dma.general (%p3272_p12), %s1442_s5, 768, %s1430_s11, %s1418_s4, %s1957_s30, [#allocation16], %s1958_s2, 0  }
 0x182 PF: > { %s3273_s26 = sld [smem:[#allocation23_spill]] }
 0x183   : > { %s3274_s28 = sld [smem:[#allocation31_spill]] }
 0x188   : > { %s1469_s25 = sand.u32 1, %s3273_s26  }
 0x189   : > { %p3276_p13 = scmp.ne.s32.totalorder %s3274_s28, 0  ;;  %s1470_s29 = scalar_lea.sflag [#allocation4], %s1469_s25 }
 0x18b   : > { %p1766_p1 = pnand %p1634_p6, %p3276_p13 }
 0x18d   : > { %p1767_p0 = pneg %p1766_p1 }
 0x18f   : > { %1916 = dma.done.wait (%p1767_p0), %s1470_s29, 768  }
 0x190   : > { %1918 = vsyncadd (%p1767_p0), %s1470_s29, 4294966528  ;;  %s3277_s21 = sld [smem:[#allocation28_spill]] }
 0x191   : > { %s3278_s18 = sld [smem:[#allocation24_spill]] }
 0x192   : > { %s3279_s19 = sld [smem:[#allocation25_spill]] }
 0x193   : > { %s3280_s20 = sld [smem:[#allocation29_spill]] }
 0x196   : > { %p22_p2 = scmp.ge.s32.totalorder %s3277_s21, 4  }
 0x198   :  { %24 = sbr.rel (!%p22_p2) target bundleno = 15 (0xf), region = 198 }
 0x19d   :  { %1475 = vsyncpa [#allocation3], 1 }
 0x19e   :  { %1477 = vsyncpa [#allocation3 + $0x1], 1 }
 0x19f   :  { %1478 = vsyncpa [#allocation9], 1 }
 0x1a0   :  { %1480 = vsyncpa [#allocation9 + $0x1], 1 }
 0x1a1   :  { %1481 = vsyncpa [#allocation4], 1 }
 0x1a2   :  { %1483 = vsyncpa [#allocation4 + $0x1], 1 }
 0x1a3   :  { %1484 = vsyncpa [#allocation5], 1 }
 0x1a4   :  { %1486 = vsyncpa [#allocation5 + $0x1], 1 }

</bundles_post_ra>
